<compile_context>
chip_gen: v7x
topology: tpu7x:2x2x1
jax: 0.10.0
libtpu: 0.0.40
codegen_flags: <defaults>
</compile_context>

<pallas_src>
import math

import jax
import jax.numpy as jnp
import numpy as np
from jax.experimental import pallas as pl
from jax.experimental.pallas import tpu as pltpu

N = 2          # batch
L0 = 500       # fc0 output length (Conv1d input length)
BN_EPS = 1e-5

_W_COLS = (0, 32, 64, 96)   # lane offsets of the per-layer packed conv weights


# ------------------------------ Pallas kernel ------------------------------
def net_kernel(x_ref, misc_ref, w_ref, t_ref,
               s1_ref, s2_ref, s3_ref, s4_ref, out_ref):
    misc = misc_ref[...]          # (3, 500): [fc0_w ; fc0_b ; fc1 packed]
    w_all = w_ref[...]            # (64, 128): packed per-layer conv weights
    t_all = t_ref[...]            # (32, 4):  packed per-layer folded shifts

    # fc0: Linear(1, 500) has contraction dim 1 -> VPU outer product.
    h = x_ref[...] * misc[0:1, :] + misc[1:2, :]              # (N, 500)

    def block(h, W, t, sel):
        """Conv1d(k=2) + BN(eval, folded) + ReLU + MaxPool1d(2,2).

        Batch is folded onto sublanes (rows are (n, channel), n-major).
        h  : (N*Cin, L)
        W  : (2*N*Cout, N*Cin)  BN-scaled taps [tap0 ; tap1], block-diag batch
        t  : (N*Cout, 1)        folded conv-bias + BN shift
        sel: (L-2, (L-1)//2)    0/1 even-column decimation matrix (host-built)
        """
        nco = W.shape[0] // 2
        L = h.shape[1]
        lc = L - 1                                             # conv out length
        d = jnp.dot(W, h, preferred_element_type=jnp.float32)  # (2*NCo, L)
        c = jnp.maximum(d[:nco, :lc] + d[nco:, 1:] + t, 0.0)   # conv+BN+ReLU
        m = jnp.maximum(c[:, :lc - 1], c[:, 1:])               # adjacent max
        # keep even columns (MaxPool stride 2) via precomputed 0/1 selector
        return jnp.dot(m, sel, preferred_element_type=jnp.float32)

    h = block(h, w_all[0:16, 0:2],   t_all[0:8, 0:1],  s1_ref[...])   # (8, 249)
    h = block(h, w_all[0:64, 32:40], t_all[0:32, 1:2], s2_ref[...])   # (32, 124)
    h = block(h, w_all[0:64, 64:96], t_all[0:32, 2:3], s3_ref[...])   # (32, 61)
    h = block(h, w_all[0:4, 96:128], t_all[0:2, 3:4],  s4_ref[...])   # (2, 30)

    # fc1: Linear(30, 1) on the VPU (lane-dim reduction).
    out_ref[...] = (jnp.sum(h * misc[2:3, 0:30], axis=1, keepdims=True)
                    + misc[2:3, 30:31])                                # (N, 1)


# --------------------- host-side (one-time) parameter packing ---------------------
def _fold_bn(W, b, g, be):
    """Fold eval-mode BN (running mean=0, var=1) into conv weights / shift."""
    W = np.asarray(W, np.float32)
    b = np.asarray(b, np.float32)
    g = np.asarray(g, np.float32)
    be = np.asarray(be, np.float32)
    s = g / np.sqrt(1.0 + BN_EPS)                               # (Cout,)
    W0 = W[:, :, 0] * s[:, None]                                # (Cout, Cin)
    W1 = W[:, :, 1] * s[:, None]
    t = b * s + be                                              # (Cout,)
    return W0, W1, t


def _batch_blockdiag(Wt, n):
    """(Cout, Cin) -> (n*Cout, n*Cin) block-diagonal (batch folded on rows)."""
    Cout, Cin = Wt.shape
    out = np.zeros((n * Cout, n * Cin), np.float32)
    for k in range(n):
        out[k * Cout:(k + 1) * Cout, k * Cin:(k + 1) * Cin] = Wt
    return out


def _make_sel(L):
    """MaxPool1d(2,2) even-column decimation selector for conv-out length L-1."""
    Lc = L - 1
    lout = Lc // 2
    sel = np.zeros((Lc - 1, lout), np.float32)
    sel[2 * np.arange(lout), np.arange(lout)] = 1.0
    return sel


def pack_params(p):
    """One-time packing of all parameters into 3 small slabs + 4 selectors."""
    # fc0 / fc1 parameters packed into one small slab.
    misc = np.zeros((3, L0), np.float32)
    misc[0, :] = np.asarray(p["fc0_w"], np.float32).reshape(L0)
    misc[1, :] = np.asarray(p["fc0_b"], np.float32).reshape(L0)
    misc[2, :30] = np.asarray(p["fc1_w"], np.float32).reshape(30)
    misc[2, 30] = np.asarray(p["fc1_b"], np.float32).reshape(())

    # Per-layer conv weights (BN-scaled, both taps stacked, block-diag over
    # batch) packed into a single (64, 128) slab; folded shifts into (32, 4).
    w_all = np.zeros((64, 128), np.float32)
    t_all = np.zeros((32, 4), np.float32)
    sels = []
    L = L0
    for idx, i in enumerate((1, 2, 3, 4)):
        W0, W1, t = _fold_bn(p[f"w{i}"], p[f"b{i}"], p[f"g{i}"], p[f"be{i}"])
        Ws = np.concatenate([_batch_blockdiag(W0, N),
                             _batch_blockdiag(W1, N)], axis=0)   # (2N*Co, N*Ci)
        r, c = Ws.shape
        w_all[:r, _W_COLS[idx]:_W_COLS[idx] + c] = Ws
        t_rep = np.tile(t, (N,)).reshape(-1, 1)                  # (N*Cout, 1)
        t_all[:t_rep.shape[0], idx:idx + 1] = t_rep
        sels.append(jnp.asarray(_make_sel(L)))
        L = (L - 1) // 2

    return {"misc": jnp.asarray(misc),
            "w": jnp.asarray(w_all),
            "t": jnp.asarray(t_all),
            "sels": tuple(sels)}


# ------------------------------ jitted forward ------------------------------
@jax.jit
def _forward_impl(x2, misc, w_all, t_all, s1, s2, s3, s4):
    vmem = pl.BlockSpec(memory_space=pltpu.MemorySpace.VMEM)
    return pl.pallas_call(
        net_kernel,
        out_shape=jax.ShapeDtypeStruct((N, 1), jnp.float32),
        in_specs=[vmem] * 8,
        out_specs=vmem,
    )(x2, misc, w_all, t_all, s1, s2, s3, s4)


def net_forward(x, packed):
    """x: (N, 1, 1) float32  ->  (N, 1, 1) float32."""
    x2 = x.reshape(N, 1).astype(jnp.float32)
    out = _forward_impl(x2, packed["misc"], packed["w"], packed["t"],
                        *packed["sels"])
    return out.reshape(N, 1, 1)


# ----------------------- pure-JAX reference (for checking) -----------------------
def ref_forward(x, p):
    h = jnp.einsum("nci,oi->nco", x, p["fc0_w"]) + p["fc0_b"][None, None, :]

    def block(h, W, b, g, be):
        c = (jnp.einsum("ncl,oc->nol", h[:, :, :-1], W[:, :, 0])
             + jnp.einsum("ncl,oc->nol", h[:, :, 1:], W[:, :, 1])
             + b[None, :, None])
        c = c * (g / jnp.sqrt(1.0 + BN_EPS))[None, :, None] + be[None, :, None]
        c = jnp.maximum(c, 0.0)
        lout = c.shape[-1] // 2
        c = c[:, :, :2 * lout].reshape(c.shape[0], c.shape[1], lout, 2).max(-1)
        return c

    for i in (1, 2, 3, 4):
        h = block(h, p[f"w{i}"], p[f"b{i}"], p[f"g{i}"], p[f"be{i}"])
    return jnp.einsum("ncl,ol->nco", h, p["fc1_w"]) + p["fc1_b"][None, None, :]


# ----------------------- deterministic parameter init -----------------------
def init_params(key):
    def u(k, shape, fan_in):
        bound = 1.0 / math.sqrt(fan_in)
        return jax.random.uniform(k, shape, jnp.float32, -bound, bound)

    ks = jax.random.split(key, 12)
    p = {
        "fc0_w": u(ks[0], (500, 1), 1), "fc0_b": u(ks[1], (500,), 1),
        "w1": u(ks[2], (4, 1, 2), 2),   "b1": u(ks[3], (4,), 2),
        "w2": u(ks[4], (16, 4, 2), 8),  "b2": u(ks[5], (16,), 8),
        "w3": u(ks[6], (16, 16, 2), 32),"b3": u(ks[7], (16,), 32),
        "w4": u(ks[8], (1, 16, 2), 32), "b4": u(ks[9], (1,), 32),
        "fc1_w": u(ks[10], (1, 30), 30),"fc1_b": u(ks[11], (1,), 30),
    }
    for i, c in zip((1, 2, 3, 4), (4, 16, 16, 1)):   # BatchNorm1d affine defaults
        p[f"g{i}"] = jnp.ones((c,), jnp.float32)
        p[f"be{i}"] = jnp.zeros((c,), jnp.float32)
    return p


if __name__ == "__main__":
    key = jax.random.PRNGKey(0)
    k_x, k_p = jax.random.split(key)
    x = jax.random.normal(k_x, (N, 1, 1), jnp.float32)
    params = init_params(k_p)

    packed = pack_params(params)              # one-time host-side packing
    out = net_forward(x, packed)
    out = jax.block_until_ready(out)

    ref = ref_forward(x, params)
    assert out.shape == (N, 1, 1), out.shape
    err = float(jnp.max(jnp.abs(out - ref)))
    if not np.isfinite(err) or err > 1e-3:
        raise AssertionError(f"mismatch vs reference, max|diff|={err}")
    print("KERNEL_OK")
</pallas_src>

<mosaic_0001>
module attributes {stable_mosaic.version = 11 : i64} {
  func.func @net_kernel(%arg0: memref<2x1xf32, #tpu.memory_space<vmem>>, %arg1: memref<3x500xf32, #tpu.memory_space<vmem>>, %arg2: memref<64x128xf32, #tpu.memory_space<vmem>>, %arg3: memref<32x4xf32, #tpu.memory_space<vmem>>, %arg4: memref<498x249xf32, #tpu.memory_space<vmem>>, %arg5: memref<247x124xf32, #tpu.memory_space<vmem>>, %arg6: memref<122x61xf32, #tpu.memory_space<vmem>>, %arg7: memref<59x30xf32, #tpu.memory_space<vmem>>, %arg8: memref<2x1xf32, #tpu.memory_space<vmem>>) attributes {dimension_semantics = [], scalar_prefetch = 0 : i64, scratch_operands = 0 : i64, tpu.core_type = #tpu.core_type<tc>} {
    %c0 = arith.constant 0 : index
    %c0_0 = arith.constant 0 : index
    %0 = vector.load %arg1[%c0, %c0_0] : memref<3x500xf32, #tpu.memory_space<vmem>>, vector<3x500xf32>
    %c0_1 = arith.constant 0 : index
    %c0_2 = arith.constant 0 : index
    %1 = vector.load %arg2[%c0_1, %c0_2] : memref<64x128xf32, #tpu.memory_space<vmem>>, vector<64x128xf32>
    %c0_3 = arith.constant 0 : index
    %c0_4 = arith.constant 0 : index
    %2 = vector.load %arg3[%c0_3, %c0_4] : memref<32x4xf32, #tpu.memory_space<vmem>>, vector<32x4xf32>
    %c0_5 = arith.constant 0 : index
    %c0_6 = arith.constant 0 : index
    %3 = vector.load %arg0[%c0_5, %c0_6] : memref<2x1xf32, #tpu.memory_space<vmem>>, vector<2x1xf32>
    %4 = vector.extract_strided_slice %0 {offsets = [0, 0], sizes = [1, 500], strides = [1, 1]} : vector<3x500xf32> to vector<1x500xf32>
    %5 = vector.broadcast %3 : vector<2x1xf32> to vector<2x500xf32>
    %6 = vector.broadcast %4 : vector<1x500xf32> to vector<2x500xf32>
    %7 = arith.mulf %5, %6 : vector<2x500xf32>
    %8 = vector.extract_strided_slice %0 {offsets = [1, 0], sizes = [1, 500], strides = [1, 1]} : vector<3x500xf32> to vector<1x500xf32>
    %9 = vector.broadcast %8 : vector<1x500xf32> to vector<2x500xf32>
    %10 = arith.addf %7, %9 : vector<2x500xf32>
    %11 = vector.extract_strided_slice %1 {offsets = [0, 0], sizes = [16, 2], strides = [1, 1]} : vector<64x128xf32> to vector<16x2xf32>
    %12 = vector.extract_strided_slice %2 {offsets = [0, 0], sizes = [8, 1], strides = [1, 1]} : vector<32x4xf32> to vector<8x1xf32>
    %c0_7 = arith.constant 0 : index
    %c0_8 = arith.constant 0 : index
    %13 = vector.load %arg4[%c0_7, %c0_8] : memref<498x249xf32, #tpu.memory_space<vmem>>, vector<498x249xf32>
    %cst = arith.constant dense<0.000000e+00> : vector<16x500xf32>
    %14 = tpu.matmul %11, %10, %cst {dimension_numbers = #tpu.dot_dimension_numbers<[1], [0], [0], [1], [0, 0, 1, 1], [], []>} : vector<16x2xf32>, vector<2x500xf32>, vector<16x500xf32> -> vector<16x500xf32>
    %15 = vector.extract_strided_slice %14 {offsets = [0, 0], sizes = [8, 499], strides = [1, 1]} : vector<16x500xf32> to vector<8x499xf32>
    %16 = vector.extract_strided_slice %14 {offsets = [8, 1], sizes = [8, 499], strides = [1, 1]} : vector<16x500xf32> to vector<8x499xf32>
    %17 = arith.addf %15, %16 : vector<8x499xf32>
    %18 = vector.broadcast %12 : vector<8x1xf32> to vector<8x499xf32>
    %19 = arith.addf %17, %18 : vector<8x499xf32>
    %cst_9 = arith.constant 0.000000e+00 : f32
    %20 = vector.broadcast %cst_9 : f32 to vector<8x499xf32>
    %21 = arith.maximumf %19, %20 : vector<8x499xf32>
    %22 = vector.extract_strided_slice %21 {offsets = [0, 0], sizes = [8, 498], strides = [1, 1]} : vector<8x499xf32> to vector<8x498xf32>
    %23 = vector.extract_strided_slice %21 {offsets = [0, 1], sizes = [8, 498], strides = [1, 1]} : vector<8x499xf32> to vector<8x498xf32>
    %24 = arith.maximumf %22, %23 : vector<8x498xf32>
    %cst_10 = arith.constant dense<0.000000e+00> : vector<8x249xf32>
    %25 = tpu.matmul %24, %13, %cst_10 {dimension_numbers = #tpu.dot_dimension_numbers<[1], [0], [0], [1], [0, 0, 1, 1], [], []>} : vector<8x498xf32>, vector<498x249xf32>, vector<8x249xf32> -> vector<8x249xf32>
    %26 = vector.extract_strided_slice %1 {offsets = [0, 32], sizes = [64, 8], strides = [1, 1]} : vector<64x128xf32> to vector<64x8xf32>
    %27 = vector.extract_strided_slice %2 {offsets = [0, 1], sizes = [32, 1], strides = [1, 1]} : vector<32x4xf32> to vector<32x1xf32>
    %c0_11 = arith.constant 0 : index
    %c0_12 = arith.constant 0 : index
    %28 = vector.load %arg5[%c0_11, %c0_12] : memref<247x124xf32, #tpu.memory_space<vmem>>, vector<247x124xf32>
    %cst_13 = arith.constant dense<0.000000e+00> : vector<64x249xf32>
    %29 = tpu.matmul %26, %25, %cst_13 {dimension_numbers = #tpu.dot_dimension_numbers<[1], [0], [0], [1], [0, 0, 1, 1], [], []>} : vector<64x8xf32>, vector<8x249xf32>, vector<64x249xf32> -> vector<64x249xf32>
    %30 = vector.extract_strided_slice %29 {offsets = [0, 0], sizes = [32, 248], strides = [1, 1]} : vector<64x249xf32> to vector<32x248xf32>
    %31 = vector.extract_strided_slice %29 {offsets = [32, 1], sizes = [32, 248], strides = [1, 1]} : vector<64x249xf32> to vector<32x248xf32>
    %32 = arith.addf %30, %31 : vector<32x248xf32>
    %33 = vector.broadcast %27 : vector<32x1xf32> to vector<32x248xf32>
    %34 = arith.addf %32, %33 : vector<32x248xf32>
    %cst_14 = arith.constant 0.000000e+00 : f32
    %35 = vector.broadcast %cst_14 : f32 to vector<32x248xf32>
    %36 = arith.maximumf %34, %35 : vector<32x248xf32>
    %37 = vector.extract_strided_slice %36 {offsets = [0, 0], sizes = [32, 247], strides = [1, 1]} : vector<32x248xf32> to vector<32x247xf32>
    %38 = vector.extract_strided_slice %36 {offsets = [0, 1], sizes = [32, 247], strides = [1, 1]} : vector<32x248xf32> to vector<32x247xf32>
    %39 = arith.maximumf %37, %38 : vector<32x247xf32>
    %cst_15 = arith.constant dense<0.000000e+00> : vector<32x124xf32>
    %40 = tpu.matmul %39, %28, %cst_15 {dimension_numbers = #tpu.dot_dimension_numbers<[1], [0], [0], [1], [0, 0, 1, 1], [], []>} : vector<32x247xf32>, vector<247x124xf32>, vector<32x124xf32> -> vector<32x124xf32>
    %41 = vector.extract_strided_slice %1 {offsets = [0, 64], sizes = [64, 32], strides = [1, 1]} : vector<64x128xf32> to vector<64x32xf32>
    %42 = vector.extract_strided_slice %2 {offsets = [0, 2], sizes = [32, 1], strides = [1, 1]} : vector<32x4xf32> to vector<32x1xf32>
    %c0_16 = arith.constant 0 : index
    %c0_17 = arith.constant 0 : index
    %43 = vector.load %arg6[%c0_16, %c0_17] : memref<122x61xf32, #tpu.memory_space<vmem>>, vector<122x61xf32>
    %cst_18 = arith.constant dense<0.000000e+00> : vector<64x124xf32>
    %44 = tpu.matmul %41, %40, %cst_18 {dimension_numbers = #tpu.dot_dimension_numbers<[1], [0], [0], [1], [0, 0, 1, 1], [], []>} : vector<64x32xf32>, vector<32x124xf32>, vector<64x124xf32> -> vector<64x124xf32>
    %45 = vector.extract_strided_slice %44 {offsets = [0, 0], sizes = [32, 123], strides = [1, 1]} : vector<64x124xf32> to vector<32x123xf32>
    %46 = vector.extract_strided_slice %44 {offsets = [32, 1], sizes = [32, 123], strides = [1, 1]} : vector<64x124xf32> to vector<32x123xf32>
    %47 = arith.addf %45, %46 : vector<32x123xf32>
    %48 = vector.broadcast %42 : vector<32x1xf32> to vector<32x123xf32>
    %49 = arith.addf %47, %48 : vector<32x123xf32>
    %cst_19 = arith.constant 0.000000e+00 : f32
    %50 = vector.broadcast %cst_19 : f32 to vector<32x123xf32>
    %51 = arith.maximumf %49, %50 : vector<32x123xf32>
    %52 = vector.extract_strided_slice %51 {offsets = [0, 0], sizes = [32, 122], strides = [1, 1]} : vector<32x123xf32> to vector<32x122xf32>
    %53 = vector.extract_strided_slice %51 {offsets = [0, 1], sizes = [32, 122], strides = [1, 1]} : vector<32x123xf32> to vector<32x122xf32>
    %54 = arith.maximumf %52, %53 : vector<32x122xf32>
    %cst_20 = arith.constant dense<0.000000e+00> : vector<32x61xf32>
    %55 = tpu.matmul %54, %43, %cst_20 {dimension_numbers = #tpu.dot_dimension_numbers<[1], [0], [0], [1], [0, 0, 1, 1], [], []>} : vector<32x122xf32>, vector<122x61xf32>, vector<32x61xf32> -> vector<32x61xf32>
    %56 = vector.extract_strided_slice %1 {offsets = [0, 96], sizes = [4, 32], strides = [1, 1]} : vector<64x128xf32> to vector<4x32xf32>
    %57 = vector.extract_strided_slice %2 {offsets = [0, 3], sizes = [2, 1], strides = [1, 1]} : vector<32x4xf32> to vector<2x1xf32>
    %c0_21 = arith.constant 0 : index
    %c0_22 = arith.constant 0 : index
    %58 = vector.load %arg7[%c0_21, %c0_22] : memref<59x30xf32, #tpu.memory_space<vmem>>, vector<59x30xf32>
    %cst_23 = arith.constant dense<0.000000e+00> : vector<4x61xf32>
    %59 = tpu.matmul %56, %55, %cst_23 {dimension_numbers = #tpu.dot_dimension_numbers<[1], [0], [0], [1], [0, 0, 1, 1], [], []>} : vector<4x32xf32>, vector<32x61xf32>, vector<4x61xf32> -> vector<4x61xf32>
    %60 = vector.extract_strided_slice %59 {offsets = [0, 0], sizes = [2, 60], strides = [1, 1]} : vector<4x61xf32> to vector<2x60xf32>
    %61 = vector.extract_strided_slice %59 {offsets = [2, 1], sizes = [2, 60], strides = [1, 1]} : vector<4x61xf32> to vector<2x60xf32>
    %62 = arith.addf %60, %61 : vector<2x60xf32>
    %63 = vector.broadcast %57 : vector<2x1xf32> to vector<2x60xf32>
    %64 = arith.addf %62, %63 : vector<2x60xf32>
    %cst_24 = arith.constant 0.000000e+00 : f32
    %65 = vector.broadcast %cst_24 : f32 to vector<2x60xf32>
    %66 = arith.maximumf %64, %65 : vector<2x60xf32>
    %67 = vector.extract_strided_slice %66 {offsets = [0, 0], sizes = [2, 59], strides = [1, 1]} : vector<2x60xf32> to vector<2x59xf32>
    %68 = vector.extract_strided_slice %66 {offsets = [0, 1], sizes = [2, 59], strides = [1, 1]} : vector<2x60xf32> to vector<2x59xf32>
    %69 = arith.maximumf %67, %68 : vector<2x59xf32>
    %cst_25 = arith.constant dense<0.000000e+00> : vector<2x30xf32>
    %70 = tpu.matmul %69, %58, %cst_25 {dimension_numbers = #tpu.dot_dimension_numbers<[1], [0], [0], [1], [0, 0, 1, 1], [], []>} : vector<2x59xf32>, vector<59x30xf32>, vector<2x30xf32> -> vector<2x30xf32>
    %71 = vector.extract_strided_slice %0 {offsets = [2, 0], sizes = [1, 30], strides = [1, 1]} : vector<3x500xf32> to vector<1x30xf32>
    %72 = vector.broadcast %71 : vector<1x30xf32> to vector<2x30xf32>
    %73 = arith.mulf %70, %72 : vector<2x30xf32>
    %cst_26 = arith.constant dense<0.000000e+00> : vector<2xf32>
    %74 = vector.multi_reduction <add>, %73, %cst_26 [1] : vector<2x30xf32> to vector<2xf32>
    %75 = vector.shape_cast %74 : vector<2xf32> to vector<2x1xf32>
    %76 = vector.extract_strided_slice %0 {offsets = [2, 30], sizes = [1, 1], strides = [1, 1]} : vector<3x500xf32> to vector<1x1xf32>
    %77 = vector.broadcast %76 : vector<1x1xf32> to vector<2x1xf32>
    %78 = arith.addf %75, %77 : vector<2x1xf32>
    %c0_27 = arith.constant 0 : index
    %c0_28 = arith.constant 0 : index
    %79 = vector.load %arg8[%c0_27, %c0_28] : memref<2x1xf32, #tpu.memory_space<vmem>>, vector<2x1xf32>
    tpu.vector_store %arg8[%c0_27, %c0_28], %78 {strides = array<i32>} : memref<2x1xf32, #tpu.memory_space<vmem>>, vector<2x1xf32>,
    return
  }
}

</mosaic_0001>

<bundles_post_ra>
// kernel: _forward_impl.1
= control target key start
LH: loop header
LB: loop body
LE: loop exit
PB: predicated region body
PF: predicated region fallthrough
CT: control target
= control target key end

     0   :  { %13 = vsyncpa [#allocation3], 0  ;;  %s2648_s0 = inlined_call_operand.vmem [shape: f32[2,1], index: 0, kind: input, shape index: {}]   ;;  %s2649_s1 = inlined_call_operand.hbm [shape: f32[3,500], index: 1, kind: input, shape index: {}]   ;;  %s2650_s2 = inlined_call_operand.hbm [shape: f32[64,128], index: 2, kind: input, shape index: {}]   ;;  %s2651_s3 = inlined_call_operand.vmem [shape: f32[32,4], index: 3, kind: input, shape index: {}]   ;;  %s2652_s4 = inlined_call_operand.hbm [shape: f32[498,249], index: 4, kind: input, shape index: {}]   ;;  %s2653_s5 = inlined_call_operand.vmem [shape: f32[247,124], index: 5, kind: input, shape index: {}]   ;;  %s2654_s6 = inlined_call_operand.vmem [shape: f32[122,61], index: 6, kind: input, shape index: {}]   ;;  %s2655_s7 = inlined_call_operand.vmem [shape: f32[59,30], index: 7, kind: input, shape index: {}]   ;;  %s2656_s8 = inlined_call_operand.vmem [shape: f32[2,1], index: 8, kind: output, shape index: {}]  }
   0x1   :  { %14 = vsyncpa [#allocation5], 0  ;;  %s2119_s27 = smov [#allocation4]   ;;  %s2049_s9 = scalar_lea.hbm %s2650_s2, 1024 }
   0x2   :  { %s32_s28 = sshll.u32 %s2119_s27, 4  ;;  %p2050_p0 = scmp.ne.s32.totalorder %s2650_s2, %s2049_s9  ;;  %s33_s28 = int_to_ptr.vmem [resolvable:$true] %s32_s28 }
   0x3   :  { %p2053_p1 = scmp.lt.u32.totalorder %s2049_s9, %s2650_s2 }
   0x5   :  { %p2055_p2 = pnand %p2053_p1, %p2050_p0 }
   0x7   :  { %2058 = shalt.err (!%p2055_p2)
}
   0x8   :  { %s2059_s14 = scalar_lea.vmem %s33_s28, 1024  ;;  %p2064_p4 = scmp.lt.s32.totalorder %s33_s28, %s33_s28 }
   0x9   :  { %p2060_p3 = scmp.ne.s32.totalorder %s33_s28, %s2059_s14  ;;  %p2065_p5 = scmp.lt.s32.totalorder %s2059_s14, %s2059_s14 }
   0xb   :  { %p2066_p6 = por %p2065_p5, %p2064_p4 }
   0xd   :  { %p2067_p7 = pnand %p2066_p6, %p2060_p3 }
   0xf   :  { %2070 = shalt.err (!%p2067_p7)
}
  0x10   :  { %s2120_s15 = smov 128   ;;  %s2121_s16 = smov 8  }
  0x11   :  { %38 = dma.hbm_to_vmem [thread:$0]  %s2650_s2, 1024, %s33_s28, [#allocation5], %s2120_s15, %s2120_s15, %s2121_s16  }
  0x12   :  { %s2122_s19 = smov [#allocation2]   ;;  %s2123_s21 = smov [#allocation6]  }
  0x13   :  { %s23_s20 = sshll.u32 %s2122_s19, 4  ;;  %s46_s22 = sshll.u32 %s2123_s21, 4  ;;  %s24_s20 = int_to_ptr.vmem [resolvable:$true] %s23_s20  ;;  %s47_s22 = int_to_ptr.vmem [resolvable:$true] %s46_s22 }
  0x14   :  { %s2071_s25 = scalar_lea.hbm %s2649_s1, 256 }
  0x15   :  { %p2072_p8 = scmp.ne.s32.totalorder %s2649_s1, %s2071_s25  ;;  %p2075_p9 = scmp.lt.u32.totalorder %s2071_s25, %s2649_s1 }
  0x17   :  { %p2077_p10 = pnand %p2075_p9, %p2072_p8 }
  0x19   :  { %2080 = shalt.err (!%p2077_p10)
}
  0x1a   :  { %s2081_s2 = scalar_lea.vmem %s24_s20, 256  ;;  %p2086_p12 = scmp.lt.s32.totalorder %s24_s20, %s24_s20 }
  0x1b   :  { %p2082_p11 = scmp.ne.s32.totalorder %s24_s20, %s2081_s2  ;;  %p2087_p13 = scmp.lt.s32.totalorder %s2081_s2, %s2081_s2 }
  0x1d   :  { %p2088_p0 = por %p2087_p13, %p2086_p12 }
  0x1f   :  { %p2089_p1 = pnand %p2088_p0, %p2082_p11 }
  0x21   :  { %2092 = shalt.err (!%p2089_p1)
}
  0x22   :  { %26 = dma.hbm_to_vmem [thread:$0]  %s2649_s1, 256, %s24_s20, [#allocation3]  }
  0x23   :  { %s2093_s12 = scalar_lea.hbm %s2652_s4, 16128 }
  0x24   :  { %p2094_p2 = scmp.ne.s32.totalorder %s2652_s4, %s2093_s12  ;;  %p2097_p3 = scmp.lt.u32.totalorder %s2093_s12, %s2652_s4 }
  0x26   :  { %p2099_p4 = pnand %p2097_p3, %p2094_p2 }
  0x28   :  { %2102 = shalt.err (!%p2099_p4)
}
  0x29   :  { %s2103_s17 = scalar_lea.vmem %s47_s22, 16128  ;;  %p2108_p6 = scmp.lt.s32.totalorder %s47_s22, %s47_s22 }
  0x2a   :  { %p2104_p5 = scmp.ne.s32.totalorder %s47_s22, %s2103_s17  ;;  %p2109_p7 = scmp.lt.s32.totalorder %s2103_s17, %s2103_s17 }
  0x2c   :  { %p2110_p8 = por %p2109_p7, %p2108_p6 }
  0x2e   :  { %p2111_p9 = pnand %p2110_p8, %p2104_p5 }
  0x30   :  { %2114 = shalt.err (!%p2111_p9)
}
  0x31   :  { %s2124_s1 = smov 256   ;;  %s2125_s18 = smov 16  }
  0x32   :  { %52 = dma.hbm_to_vmem [thread:$0]  %s2652_s4, 16128, %s47_s22, [#allocation5], %s2124_s1, %s2124_s1, %s2125_s18  }
  0x33   :  { %2115 = dma.done.wait [#allocation3], 256  }
  0x34   :  { %2116 = vsyncadd [#allocation3], 4294967040 }
  0x35   :  { %2117 = dma.done.wait [#allocation5], 17152  }
  0x36   :  { %2118 = vsyncadd [#allocation5], 4294950144  ;;  %v2126_v0 = vmov 0   ;;  %v82_v1 = vld [vmem:[%s2648_s0] sm:$0x3]  ;;  %v2127_v3 = vmov 0.0   ;;  %v90_v4 = vlaneseq }
  0x37   :  { %2034 = vset.pattern.permute.xlu0 %v2126_v0  ;;  %v2226_v2 = vld [vmem:[%s2651_s3] sm:$0xff]  ;;  %380 = vmatprep.mubr.f32.mxu1 %v2127_v3  ;;  %v69_v9 = vld [vmem:[#allocation2 + $0x8] sm:$0x77]  ;;  %vm303_vm0 = vcmask 1041408   ;;  %v2236_v35 = vld [vmem:[#allocation4] sm:$0xff]  ;;  %vm296_vm1 = vcmask 15360  }
  0x38   :  { %85 = vperm.xlu0 %2034, %v82_v1   ;;  %v2230_v5 = vshrl.u32 %v90_v4, 7  ;;  %v68_v8 = vld [vmem:[#allocation2] sm:$0x77]  ;;  %v2244_v38 = vld [vmem:[#allocation4 + $0x8] sm:$0xff]  ;;  %s2128_s0 = smov 127   ;;  %v173_v48 = vld [vmem:[#allocation6 + $0x18] sm:$0xff] }
  0x39   :  { %v171_v47 = vld [vmem:[#allocation6 + $0x8] sm:$0xff]  ;;  %v170_v49 = vld [vmem:[#allocation6] sm:$0xff]  ;;  %v172_v51 = vld [vmem:[#allocation6 + $0x10] sm:$0xff]  ;;  %vm482_vm2 = vcmask 1039360   ;;  %s2129_s4 = smov 96   ;;  %vm530_vm3 = vcmask 932864  }
  0x3a   :  { %v92_v6 = vsub.s32 0, %v2230_v5  ;;  %v96_v7 = vsub.s32 4, %v2230_v5  ;;  %v132_v10 = vsub.s32 1, %v2230_v5  ;;  %v136_v11 = vsub.s32 5, %v2230_v5  ;;  %v175_v52 = vld [vmem:[#allocation6 + $0x28] sm:$0xff]  ;;  %v177_v53 = vld [vmem:[#allocation6 + $0x38] sm:$0xff] }
  0x3b   :  { %v1782_v50 = vpack.c.bf16 %v173_v48, %v171_v47  ;;  %v1784_v54 = vpack.c.bf16 %v172_v51, %v170_v49  ;;  %v1786_v55 = vpack.c.bf16 %v177_v53, %v175_v52  ;;  %v174_v56 = vld [vmem:[#allocation6 + $0x20] sm:$0xff]  ;;  %v176_v57 = vld [vmem:[#allocation6 + $0x30] sm:$0xff]  ;;  %v179_v58 = vld [vmem:[#allocation6 + $0x48] sm:$0xff]  ;;  %vm735_vm4 = vcmask 64512  }
  0x3c   :  { %496 = vperm.xlu0 %2034, %v2226_v2   ;;  %v93_v12 = vrot.slane %v68_v8, %v92_v6  ;;  %v105_v13 = vrot.slane %v69_v9, %v96_v7  ;;  %v97_v14 = vrot.slane %v68_v8, %v96_v7  ;;  %v101_v15 = vrot.slane %v69_v9, %v92_v6  ;;  %v181_v59 = vld [vmem:[#allocation6 + $0x58] sm:$0xff]  ;;  %v178_v62 = vld [vmem:[#allocation6 + $0x40] sm:$0xff]  ;;  %v180_v63 = vld [vmem:[#allocation6 + $0x50] sm:$0xff] }
  0x3d   :  { %v137_v16 = vrot.slane %v68_v8, %v136_v11  ;;  %v133_v17 = vrot.slane %v68_v8, %v132_v10  ;;  %v145_v21 = vrot.slane %v69_v9, %v136_v11  ;;  %v141_v23 = vrot.slane %v69_v9, %v132_v10  ;;  %1783 = vmatprep.subr.bf16.mxu0 %v1782_v50  ;;  %v183_v0 = vld [vmem:[#allocation6 + $0x68] sm:$0xff]  ;;  %v185_v1 = vld [vmem:[#allocation6 + $0x78] sm:$0xff]  ;;  %v182_v7 = vld [vmem:[#allocation6 + $0x60] sm:$0xff] }
  0x3e   :  { %v113_v18 = vrot.slane %v93_v12, %v92_v6  ;;  %v125_v19 = vrot.slane %v105_v13, %v92_v6  ;;  %v117_v20 = vrot.slane %v97_v14, %v92_v6  ;;  %v121_v22 = vrot.slane %v101_v15, %v92_v6  ;;  %1785 = vmatpush1.bf16.msra.mxu0 %v1784_v54  ;;  %v184_v8 = vld [vmem:[#allocation6 + $0x70] sm:$0xff]  ;;  %v187_v9 = vld [vmem:[#allocation6 + $0x88] sm:$0xff]  ;;  %v186_v13 = vld [vmem:[#allocation6 + $0x80] sm:$0xff] }
  0x3f   :  { %v157_v24 = vrot.slane %v137_v16, %v132_v10  ;;  %v153_v25 = vrot.slane %v133_v17, %v132_v10  ;;  %v165_v30 = vrot.slane %v145_v21, %v132_v10  ;;  %v161_v32 = vrot.slane %v141_v23, %v132_v10  ;;  %1787 = vmatprep.subr.bf16.mxu0 %v1786_v55  ;;  %v189_v10 = vld [vmem:[#allocation6 + $0x98] sm:$0xff]  ;;  %v188_v14 = vld [vmem:[#allocation6 + $0x90] sm:$0xff]  ;;  %v191_v15 = vld [vmem:[#allocation6 + $0xa8] sm:$0xff] }
  0x40   :  { %v1788_v60 = vpack.c.bf16 %v176_v57, %v174_v56  ;;  %v1790_v61 = vpack.c.bf16 %v181_v59, %v179_v58  ;;  %v1792_v4 = vpack.c.bf16 %v180_v63, %v178_v62  ;;  %v1794_v6 = vpack.c.bf16 %v185_v1, %v183_v0  ;;  %v193_v16 = vld [vmem:[#allocation6 + $0xb8] sm:$0xff]  ;;  %v195_v21 = vld [vmem:[#allocation6 + $0xc8] sm:$0xff]  ;;  %v206_v49 = vld [vmem:[#allocation6 + $0x120] sm:$0xff] }
  0x41   :  { %v1796_v11 = vpack.c.bf16 %v184_v8, %v182_v7  ;;  %v1798_v12 = vpack.c.bf16 %v189_v10, %v187_v9  ;;  %v1800_v17 = vpack.c.bf16 %v188_v14, %v186_v13  ;;  %v208_v50 = vld [vmem:[#allocation6 + $0x130] sm:$0xff]  ;;  %v211_v51 = vld [vmem:[#allocation6 + $0x148] sm:$0xff]  ;;  %v213_v52 = vld [vmem:[#allocation6 + $0x158] sm:$0xff]  ;;  %vm1001_vm5 = vcmask 1046528  }
  0x42   :  { %1789 = vmatpush1.bf16.msra.mxu0 %v1788_v60  ;;  %v1820_v53 = vpack.c.bf16 %v208_v50, %v206_v49  ;;  %v1822_v54 = vpack.c.bf16 %v213_v52, %v211_v51  ;;  %v210_v55 = vld [vmem:[#allocation6 + $0x140] sm:$0xff]  ;;  %v212_v56 = vld [vmem:[#allocation6 + $0x150] sm:$0xff]  ;;  %v215_v57 = vld [vmem:[#allocation6 + $0x168] sm:$0xff]  ;;  %vm988_vm6 = vcmask 973824   ;;  %vm1122_vm7 = vcmask 261120  }
  0x43   :  { %1791 = vmatprep.subr.bf16.mxu0 %v1790_v61  ;;  %v217_v58 = vld [vmem:[#allocation6 + $0x178] sm:$0xff]  ;;  %v1824_v59 = vpack.c.bf16 %v212_v56, %v210_v55  ;;  %v214_v61 = vld [vmem:[#allocation6 + $0x160] sm:$0xff]  ;;  %v216_v62 = vld [vmem:[#allocation6 + $0x170] sm:$0xff]  ;;  %vm2134_vm8 = vmmov 1   ;;  %vm1308_vm10 = vcmask 998400   ;;  %vm2136_vm11 = vmmov 0  }
  0x44   :  { %v1826_v60 = vpack.c.bf16 %v217_v58, %v215_v57  ;;  %v219_v63 = vld [vmem:[#allocation6 + $0x188] sm:$0xff]  ;;  %v221_v0 = vld [vmem:[#allocation6 + $0x198] sm:$0xff]  ;;  %v1828_v1 = vpack.c.bf16 %v216_v62, %v214_v61  ;;  %v220_v7 = vld [vmem:[#allocation6 + $0x190] sm:$0xff]  ;;  %vm1512_vm12 = vcmask 1042432   ;;  %vm1508_vm14 = vcmask 482304  }
  0x45   :  { %v223_v8 = vld [vmem:[#allocation6 + $0x1a8] sm:$0xff]  ;;  %v225_v9 = vld [vmem:[#allocation6 + $0x1b8] sm:$0xff]  ;;  %v224_v13 = vld [vmem:[#allocation6 + $0x1b0] sm:$0xff]  ;;  %vm1591_vm15 = vcmask 238592  }
  0x46   :  { %1793 = vmatpush1.bf16.msra.mxu0 %v1792_v4  ;;  %v1830_v4 = vpack.c.bf16 %v221_v0, %v219_v63  ;;  %v227_v14 = vld [vmem:[#allocation6 + $0x1c8] sm:$0xff]  ;;  %v2287_v55 = vld [vmem:[#allocation4 + $0x20] sm:$0xff]  ;;  %v2293_v57 = vld [vmem:[#allocation4 + $0x30] sm:$0xff] }
  0x47   :  { %1795 = vmatprep.subr.bf16.mxu0 %v1794_v6  ;;  %v218_v6 = vld [vmem:[#allocation6 + $0x180] sm:$0xff]  ;;  %v2289_v56 = vld [vmem:[#allocation4 + $0x28] sm:$0xff]  ;;  %v236_v62 = vld [vmem:[#allocation6 + $0x210] sm:$0xff] }
  0x48   :  { %v1832_v10 = vpack.c.bf16 %v220_v7, %v218_v6  ;;  %v234_v61 = vld [vmem:[#allocation6 + $0x200] sm:$0xff]  ;;  %v239_v63 = vld [vmem:[#allocation6 + $0x228] sm:$0xff]  ;;  %v241_v0 = vld [vmem:[#allocation6 + $0x238] sm:$0xff] }
  0x49   :  { %vm1988_vm9 = vmpackc.low %vm303_vm0, %vm2134_vm8 }
  0x4a   :  { %1797 = vmatpush1.bf16.msra.mxu0 %v1796_v11  ;;  %v1834_v11 = vpack.c.bf16 %v225_v9, %v223_v8  ;;  %v1848_v9 = vpack.c.bf16 %v236_v62, %v234_v61  ;;  %v269_v61 = vld [vmem:[#allocation6 + $0x318] sm:$0xff]  ;;  %vm2010_vm13 = vmpackc.low %vm1512_vm12, %vm2134_vm8 }
  0x4b   :  { %1799 = vmatprep.subr.bf16.mxu0 %v1798_v12  ;;  %v222_v12 = vld [vmem:[#allocation6 + $0x1a0] sm:$0xff] }
  0x4e   :  { %1801 = vmatpush1.bf16.msra.mxu0 %v1800_v17 }
  0xb7   :  { %v86_v26 = vpop.permute.xlu0 %85 }
  0xb8   :  { %v126_v27 = vmul.f32 %v113_v18, %v86_v26  ;;  %v129_v28 = vmul.f32 %v125_v19, %v86_v26  ;;  %v127_v29 = vmul.f32 %v117_v20, %v86_v26  ;;  %v128_v31 = vmul.f32 %v121_v22, %v86_v26  ;;  %v190_v19 = vld [vmem:[#allocation6 + $0xa0] sm:$0xff]  ;;  %v192_v20 = vld [vmem:[#allocation6 + $0xb0] sm:$0xff]  ;;  %v197_v22 = vld [vmem:[#allocation6 + $0xd8] sm:$0xff] }
  0xb9   :  { %v1802_v18 = vpack.c.bf16 %v193_v16, %v191_v15  ;;  %v1804_v23 = vpack.c.bf16 %v192_v20, %v190_v19  ;;  %v196_v26 = vld [vmem:[#allocation6 + $0xd0] sm:$0xff]  ;;  %v229_v15 = vld [vmem:[#allocation6 + $0x1d8] sm:$0xff]  ;;  %v1836_v16 = vpack.c.bf16 %v224_v13, %v222_v12  ;;  %v238_v12 = vld [vmem:[#allocation6 + $0x220] sm:$0xff] }
  0xba   :  { %v167_v33 = vadd.f32 %v157_v24, %v127_v29  ;;  %v166_v34 = vadd.f32 %v153_v25, %v126_v27  ;;  %v169_v36 = vadd.f32 %v165_v30, %v129_v28  ;;  %v168_v37 = vadd.f32 %v161_v32, %v128_v31  ;;  %v194_v25 = vld [vmem:[#allocation6 + $0xc0] sm:$0xff]  ;;  %v199_v27 = vld [vmem:[#allocation6 + $0xe8] sm:$0xff]  ;;  %v201_v28 = vld [vmem:[#allocation6 + $0xf8] sm:$0xff] }
  0xbb   :  { %1803 = vmatprep.subr.bf16.mxu0 %v1802_v18  ;;  %v1806_v24 = vpack.c.bf16 %v197_v22, %v195_v21  ;;  %v1808_v29 = vpack.c.bf16 %v196_v26, %v194_v25  ;;  %v1810_v30 = vpack.c.bf16 %v201_v28, %v199_v27  ;;  %v198_v31 = vld [vmem:[#allocation6 + $0xe0] sm:$0xff]  ;;  %v200_v32 = vld [vmem:[#allocation6 + $0xf0] sm:$0xff]  ;;  %v1838_v17 = vpack.c.bf16 %v229_v15, %v227_v14  ;;  %v231_v22 = vld [vmem:[#allocation6 + $0x1e8] sm:$0xff] }
  0xbc   :  { %1608 = vmatprep.subr.msk.mxu1 %vm303_vm0, %v167_v33  ;;  %1805 = vmatpush1.bf16.msra.mxu0 %v1804_v23  ;;  %v203_v33 = vld [vmem:[#allocation6 + $0x108] sm:$0xff]  ;;  %v226_v18 = vld [vmem:[#allocation6 + $0x1c0] sm:$0xff]  ;;  %v228_v19 = vld [vmem:[#allocation6 + $0x1d0] sm:$0xff] }
  0xbd   :  { %1609 = vmatpush1.msk.msra.mxu1 %vm303_vm0, %v166_v34  ;;  %1807 = vmatprep.subr.bf16.mxu0 %v1806_v24  ;;  %v205_v34 = vld [vmem:[#allocation6 + $0x118] sm:$0xff]  ;;  %v1840_v20 = vpack.c.bf16 %v228_v19, %v226_v18  ;;  %v497_v24 = vpop.permute.xlu0 %496  ;;  %v230_v26 = vld [vmem:[#allocation6 + $0x1e0] sm:$0xff]  ;;  %v232_v27 = vld [vmem:[#allocation6 + $0x1f0] sm:$0xff] }
  0xbe   :  { %1610 = vmatmul.mubr.msk.f32.vlgmr.msra.gmra.mrb[0].mxu1 %vm296_vm1, %v2236_v35  ;;  %1612 = vmatprep.subr.msk.mxu1 %vm303_vm0, %v169_v36  ;;  %v1812_v36 = vpack.c.bf16 %v200_v32, %v198_v31  ;;  %v233_v23 = vld [vmem:[#allocation6 + $0x1f8] sm:$0xff]  ;;  %v1844_v28 = vpack.c.bf16 %v232_v27, %v230_v26  ;;  %v240_v13 = vld [vmem:[#allocation6 + $0x230] sm:$0xff]  ;;  %v243_v14 = vld [vmem:[#allocation6 + $0x248] sm:$0xff] }
  0xbf   :  { %1613 = vmatpush1.msk.msra.mxu1 %vm303_vm0, %v168_v37  ;;  %386 = vmatprep.mubr.f32.mxu1 %v2127_v3  ;;  %v1814_v37 = vpack.c.bf16 %v205_v34, %v203_v33  ;;  %v1842_v25 = vpack.c.bf16 %v233_v23, %v231_v22  ;;  %v237_v31 = vld [vmem:[#allocation6 + $0x218] sm:$0xff]  ;;  %v242_v18 = vld [vmem:[#allocation6 + $0x240] sm:$0xff]  ;;  %v244_v19 = vld [vmem:[#allocation6 + $0x250] sm:$0xff] }
  0xc0   :  { %1809 = vmatpush1.bf16.msra.mxu0 %v1808_v29  ;;  %v245_v15 = vld [vmem:[#allocation6 + $0x258] sm:$0xff]  ;;  %v1856_v22 = vpack.c.bf16 %v244_v19, %v242_v18  ;;  %v251_v26 = vld [vmem:[#allocation6 + $0x288] sm:$0xff] }
  0xc1   :  { %1811 = vmatprep.subr.bf16.mxu0 %v1810_v30  ;;  %v235_v30 = vld [vmem:[#allocation6 + $0x208] sm:$0xff]  ;;  %v253_v27 = vld [vmem:[#allocation6 + $0x298] sm:$0xff] }
  0xc2   :  { %1611 = vmatmul.mubr.msk.f32.gmra.mrb[2].mxu1 %vm296_vm1, %v2244_v38  ;;  %v1846_v34 = vpack.c.bf16 %v237_v31, %v235_v30  ;;  %v250_v30 = vld [vmem:[#allocation6 + $0x280] sm:$0xff]  ;;  %v252_v31 = vld [vmem:[#allocation6 + $0x290] sm:$0xff]  ;;  %v279_v18 = vld [vmem:[#allocation6 + $0x368] sm:$0xff] }
  0xc3   :  { %457 = vmatprep.mubr.f32.mxu1 %v2127_v3  ;;  %v281_v19 = vld [vmem:[#allocation6 + $0x378] sm:$0xff] }
  0xc4   :  { %1813 = vmatpush1.bf16.msra.mxu0 %v1812_v36 }
  0xc5   :  { %1815 = vmatprep.subr.bf16.mxu0 %v1814_v37 }
  0xc6   :  { %1614 = vmatmul.mubr.msk.f32.vlgmr.msra.gmra.mrb[4].mxu1 %vm296_vm1, %v2236_v35 }
  0xc7   :  { %463 = vmatprep.mubr.f32.mxu1 %v2127_v3 }
  0xca   :  { %1615 = vmatmul.mubr.msk.f32.gmra.mrb[6].mxu1 %vm296_vm1, %v2244_v38 }
  0xcb   :  { %816 = vmatprep.mubr.f32.mxu1 %v2127_v3 }
 0x191   :  { %v2252_v39 = vpop.f32.mrb[0].mxu1 }
 0x192   :  { %v2254_v40 = vpop.f32.mrb[1].mxu1 }
 0x195   :  { %v388_v41 = vpop.f32.mrb[2].mxu1 }
 0x196   :  { %v390_v42 = vpop.f32.mrb[3].mxu1 }
 0x197   :  { %476 = vrot.lane.b32.xlu1 %v390_v42, %s2128_s0  ;;  %v204_v42 = vld [vmem:[#allocation6 + $0x110] sm:$0xff] }
 0x199   :  { %v2257_v43 = vpop.f32.mrb[4].mxu1 }
 0x19a   :  { %v2259_v44 = vpop.f32.mrb[5].mxu1 }
 0x19d   :  { %v465_v45 = vpop.f32.mrb[6].mxu1 }
 0x19e   :  { %478 = vrot.lane.b32.xlu1 %v465_v45, %s2128_s0  ;;  %v467_v46 = vpop.f32.mrb[7].mxu1  ;;  %v207_v45 = vld [vmem:[#allocation6 + $0x128] sm:$0xff] }
 0x19f   :  { %480 = vrot.lane.b32.xlu0 %v467_v46, %s2128_s0  ;;  %v209_v46 = vld [vmem:[#allocation6 + $0x138] sm:$0xff] }
 0x1a0   :  { %v1818_v48 = vpack.c.bf16 %v209_v46, %v207_v45 }
 0x1a2   :  { %474 = vrot.lane.b32.xlu1 %v388_v41, %s2128_s0  ;;  %v202_v41 = vld [vmem:[#allocation6 + $0x100] sm:$0xff] }
 0x1a3   :  { %v1816_v47 = vpack.c.bf16 %v204_v42, %v202_v41 }
 0x1a5   :  { %1817 = vmatpush1.bf16.msra.mxu0 %v1816_v47 }
 0x1a6   :  { %1819 = vmatprep.subr.bf16.mxu0 %v1818_v48 }
 0x1a9   :  { %1821 = vmatpush1.bf16.msra.mxu0 %v1820_v53 }
 0x1aa   :  { %1823 = vmatprep.subr.bf16.mxu0 %v1822_v54  ;;  %v2283_v54 = vld [vmem:[#allocation4 + $0x18] sm:$0xff] }
 0x1ad   :  { %1825 = vmatpush1.bf16.msra.mxu0 %v1824_v59 }
 0x1ae   :  { %1827 = vmatprep.subr.bf16.mxu0 %v1826_v60 }
 0x1b1   :  { %1829 = vmatpush1.bf16.msra.mxu0 %v1828_v1 }
 0x1b2   :  { %1831 = vmatprep.subr.bf16.mxu0 %v1830_v4 }
 0x1b5   :  { %1833 = vmatpush1.bf16.msra.mxu0 %v1832_v10 }
 0x1b6   :  { %1835 = vmatprep.subr.bf16.mxu0 %v1834_v11  ;;  %v1850_v11 = vpack.c.bf16 %v241_v0, %v239_v63  ;;  %v266_v0 = vld [vmem:[#allocation6 + $0x300] sm:$0xff] }
 0x1b9   :  { %1837 = vmatpush1.bf16.msra.mxu0 %v1836_v16  ;;  %v1852_v16 = vpack.c.bf16 %v240_v13, %v238_v12  ;;  %v275_v12 = vld [vmem:[#allocation6 + $0x348] sm:$0xff]  ;;  %v277_v13 = vld [vmem:[#allocation6 + $0x358] sm:$0xff] }
 0x1ba   :  { %1839 = vmatprep.subr.bf16.mxu0 %v1838_v17  ;;  %v1854_v17 = vpack.c.bf16 %v245_v15, %v243_v14  ;;  %v1886_v15 = vpack.c.bf16 %v277_v13, %v275_v12 }
 0x1bd   :  { %1841 = vmatpush1.bf16.msra.mxu0 %v1840_v20  ;;  %v247_v20 = vld [vmem:[#allocation6 + $0x268] sm:$0xff] }
 0x1be   :  { %1843 = vmatprep.subr.bf16.mxu0 %v1842_v25  ;;  %v248_v25 = vld [vmem:[#allocation6 + $0x270] sm:$0xff] }
 0x1c1   :  { %1845 = vmatpush1.bf16.msra.mxu0 %v1844_v28 }
 0x1c2   :  { %1847 = vmatprep.subr.bf16.mxu0 %v1846_v34  ;;  %v1864_v34 = vpack.c.bf16 %v252_v31, %v250_v30  ;;  %v287_v30 = vld [vmem:[#allocation6 + $0x3a8] sm:$0xff]  ;;  %v289_v31 = vld [vmem:[#allocation6 + $0x3b8] sm:$0xff] }
 0x209   :  { %v477_v21 = vpop.permute.xlu1 %476 }
 0x210   :  { %v479_v29 = vpop.permute.xlu1 %478 }
 0x211   :  { %v484_v32 = vsel %vm482_vm2, %v477_v21, %v479_v29  ;;  %v481_v33 = vpop.permute.xlu0 %480 }
 0x212   :  { %v491_v36 = vadd.f32 %v484_v32, %v2254_v40  ;;  %v485_v37 = vsel %vm482_vm2, %v479_v29, %v481_v33  ;;  %v493_v46 = vadd.f32 %v481_v33, %v2259_v44  ;;  %v1862_v29 = vpack.c.bf16 %v253_v27, %v251_v26  ;;  %v255_v32 = vld [vmem:[#allocation6 + $0x2a8] sm:$0xff]  ;;  %v257_v33 = vld [vmem:[#allocation6 + $0x2b8] sm:$0xff] }
 0x213   :  { %v492_v41 = vadd.f32 %v485_v37, %v2257_v43  ;;  %v254_v37 = vld [vmem:[#allocation6 + $0x2a0] sm:$0xff] }
 0x214   :  { %v500_v42 = vadd.f32 %v497_v24, %v491_v36  ;;  %v475_v45 = vpop.permute.xlu1 %474  ;;  %v502_v40 = vadd.f32 %v497_v24, %v493_v46  ;;  %v1866_v36 = vpack.c.bf16 %v257_v33, %v255_v32  ;;  %v1898_v33 = vpack.c.bf16 %v289_v31, %v287_v30  ;;  %v688_v31 = vld [vmem:[%s2653_s5 + $0x30] sm:$0xff] }
 0x215   :  { %v2269_v47 = vadd.f32 %v497_v24, %v492_v41  ;;  %v483_v48 = vsel %vm482_vm2, %v475_v45, %v477_v21  ;;  %v249_v21 = vld [vmem:[#allocation6 + $0x278] sm:$0xff]  ;;  %v256_v41 = vld [vmem:[#allocation6 + $0x2b0] sm:$0xff] }
 0x216   :  { %v504_v49 = vmax.f32 %v500_v42, 0.0  ;;  %v490_v50 = vadd.f32 %v483_v48, %v2252_v39  ;;  %v506_v44 = vmax.f32 %v502_v40, 0.0  ;;  %v2281_v39 = vld [vmem:[#allocation4 + $0x10] sm:$0xff]  ;;  %v1858_v23 = vpack.c.bf16 %v249_v21, %v247_v20  ;;  %v259_v42 = vld [vmem:[#allocation6 + $0x2c8] sm:$0xff]  ;;  %v261_v45 = vld [vmem:[#allocation6 + $0x2d8] sm:$0xff] }
 0x217   :  { %v505_v51 = vmax.f32 %v2269_v47, 0.0  ;;  %v1868_v46 = vpack.c.bf16 %v256_v41, %v254_v37  ;;  %v1870_v48 = vpack.c.bf16 %v261_v45, %v259_v42  ;;  %v265_v40 = vld [vmem:[#allocation6 + $0x2f8] sm:$0xff]  ;;  %v1890_v21 = vpack.c.bf16 %v281_v19, %v279_v18  ;;  %v291_v37 = vld [vmem:[#allocation6 + $0x3c8] sm:$0xff] }
 0x218   :  { %v499_v52 = vadd.f32 %v497_v24, %v490_v50  ;;  %v246_v24 = vld [vmem:[#allocation6 + $0x260] sm:$0xff]  ;;  %v260_v50 = vld [vmem:[#allocation6 + $0x2d0] sm:$0xff]  ;;  %v293_v41 = vld [vmem:[#allocation6 + $0x3d8] sm:$0xff] }
 0x219   :  { %v2035_v53 = vpack.i.bf16 %v505_v51, %v504_v49  ;;  %v1860_v28 = vpack.c.bf16 %v248_v25, %v246_v24  ;;  %v283_v24 = vld [vmem:[#allocation6 + $0x388] sm:$0xff]  ;;  %v285_v25 = vld [vmem:[#allocation6 + $0x398] sm:$0xff]  ;;  %v1902_v45 = vpack.c.bf16 %v293_v41, %v291_v37  ;;  %v692_v41 = vld [vmem:[%s2653_s5 + $0x50] sm:$0xff] }
 0x21a   :  { %v503_v43 = vmax.f32 %v499_v52, 0.0  ;;  %v263_v52 = vld [vmem:[#allocation6 + $0x2e8] sm:$0xff]  ;;  %v1894_v27 = vpack.c.bf16 %v285_v25, %v283_v24  ;;  %v2131_v24 = vmov 0.0|0.0  }
 0x21b   :  { %2036 = vrot.lane.b32.xlu0 %v2035_v53, %s2128_s0  ;;  %v2328_v47 = vld [vmem:[%s2651_s3 + $0x18] sm:$0xff] }
 0x21c   :  { %511 = vrot.lane.b32.xlu1 %v503_v43, %s2128_s0 }
 0x21f   :  { %517 = vrot.lane.b32.xlu0 %v506_v44, %s2128_s0 }
 0x220   :  { %719 = vrot.lane.b32.xlu1 %v2236_v35, %s2129_s4  ;;  %v2295_v35 = vld [vmem:[#allocation4 + $0x38] sm:$0xff] }
 0x223   :  { %721 = vrot.lane.b32.xlu0 %v2244_v38, %s2129_s4 }
 0x224   :  { %723 = vrot.lane.b32.xlu1 %v2281_v39, %s2129_s4 }
 0x227   :  { %725 = vrot.lane.b32.xlu0 %v2283_v54, %s2129_s4 }
 0x228   :  { %727 = vrot.lane.b32.xlu1 %v2287_v55, %s2129_s4 }
 0x22b   :  { %729 = vrot.lane.b32.xlu0 %v2289_v56, %s2129_s4 }
 0x22c   :  { %731 = vrot.lane.b32.xlu1 %v2293_v57, %s2129_s4 }
 0x22f   :  { %733 = vrot.lane.b32.xlu0 %v2295_v35, %s2129_s4 }
 0x28d   :  { %v2299_v38 = vpop.permute.xlu0 %2036 }
 0x28e   :  { %v2039_v58 = vunpack.i.h.bf16 %v2299_v38  ;;  %v2038_v59 = vunpack.i.l.bf16 %v2299_v38  ;;  %v512_v60 = vpop.permute.xlu1 %511 }
 0x290   :  { %v519_v1 = vsel %vm482_vm2, %v512_v60, %v2038_v59  ;;  %v520_v4 = vsel %vm482_vm2, %v2038_v59, %v2039_v58  ;;  %v264_v59 = vld [vmem:[#allocation6 + $0x2f0] sm:$0xff]  ;;  %v267_v60 = vld [vmem:[#allocation6 + $0x308] sm:$0xff] }
 0x291   :  { %v526_v6 = vmax.f32 %v503_v43, %v519_v1  ;;  %v2307_v7 = vpop.permute.xlu0 %517  ;;  %v527_v8 = vmax.f32 %v504_v49, %v520_v4  ;;  %v258_v49 = vld [vmem:[#allocation6 + $0x2c0] sm:$0xff]  ;;  %v1874_v43 = vpack.c.bf16 %v265_v40, %v263_v52  ;;  %v1878_v63 = vpack.c.bf16 %v269_v61, %v267_v60  ;;  %v268_v1 = vld [vmem:[#allocation6 + $0x310] sm:$0xff]  ;;  %v271_v4 = vld [vmem:[#allocation6 + $0x328] sm:$0xff] }
 0x292   :  { %v529_v10 = vmax.f32 %v506_v44, %v2307_v7  ;;  %v1872_v53 = vpack.c.bf16 %v260_v50, %v258_v49  ;;  %v262_v44 = vld [vmem:[#allocation6 + $0x2e0] sm:$0xff]  ;;  %v295_v50 = vld [vmem:[#allocation6 + $0x3e8] sm:$0x3]  ;;  %v521_v52 = vsel %vm482_vm2, %v2039_v58, %v2307_v7  ;;  %v720_v58 = vpop.permute.xlu1 %719 }
 0x293   :  { %604 = vmatprep.mubr.f32.mxu0 %v527_v8  ;;  %v1876_v62 = vpack.c.bf16 %v264_v59, %v262_v44  ;;  %v1880_v8 = vpack.c.bf16 %v268_v1, %v266_v0  ;;  %v294_v40 = vld [vmem:[#allocation6 + $0x3e0] sm:$0x3]  ;;  %v2130_v44 = vmov 1  }
 0x294   :  { %605 = vmatmul.mubr.f32.vlgmr.msra.gmra.mrb[0].mxu0 %v526_v6  ;;  %v273_v6 = vld [vmem:[#allocation6 + $0x338] sm:$0xff]  ;;  %2040 = vset.pattern.permute.xlu1 %v2130_v44 }
 0x295   :  { %1849 = vmatpush1.bf16.msra.mxu0 %v1848_v9  ;;  %1618 = vmatprep.mubr.msk.f32.mxu0 %vm530_vm3, %v529_v10  ;;  %v1882_v9 = vpack.c.bf16 %v273_v6, %v271_v4  ;;  %v270_v10 = vld [vmem:[#allocation6 + $0x320] sm:$0xff]  ;;  %v722_v7 = vpop.permute.xlu0 %721 }
 0x296   :  { %1851 = vmatprep.subr.bf16.mxu0 %v1850_v11  ;;  %v272_v11 = vld [vmem:[#allocation6 + $0x330] sm:$0xff]  ;;  %2041 = vset.pattern.permute.xlu0 %v2130_v44  ;;  %v699_v44 = vld [vmem:[%s2653_s5 + $0x88] sm:$0xff] }
 0x297   :  { %v1884_v14 = vpack.c.bf16 %v272_v11, %v270_v10  ;;  %910 = vperm.xlu1 %2040, %v2226_v2   ;;  %v724_v2 = vpop.permute.xlu1 %723 }
 0x299   :  { %1853 = vmatpush1.bf16.msra.mxu0 %v1852_v16  ;;  %v274_v16 = vld [vmem:[#allocation6 + $0x340] sm:$0xff]  ;;  %v726_v59 = vpop.permute.xlu0 %725 }
 0x29a   :  { %1855 = vmatprep.subr.bf16.mxu0 %v1854_v17  ;;  %v276_v17 = vld [vmem:[#allocation6 + $0x350] sm:$0xff] }
 0x29b   :  { %v1888_v20 = vpack.c.bf16 %v276_v17, %v274_v16  ;;  %925 = vperm.xlu1 %2040, %v2328_v47   ;;  %v728_v60 = vpop.permute.xlu1 %727 }
 0x29d   :  { %1857 = vmatpush1.bf16.msra.mxu0 %v1856_v22  ;;  %v278_v22 = vld [vmem:[#allocation6 + $0x360] sm:$0xff]  ;;  %v730_v61 = vpop.permute.xlu0 %729 }
 0x29e   :  { %1859 = vmatprep.subr.bf16.mxu0 %v1858_v23  ;;  %v280_v23 = vld [vmem:[#allocation6 + $0x370] sm:$0xff] }
 0x29f   :  { %v1892_v26 = vpack.c.bf16 %v280_v23, %v278_v22  ;;  %v683_v22 = vld [vmem:[%s2653_s5 + $0x8] sm:$0xff]  ;;  %v684_v23 = vld [vmem:[%s2653_s5 + $0x10] sm:$0xff] }
 0x2a1   :  { %1861 = vmatpush1.bf16.msra.mxu0 %v1860_v28  ;;  %v282_v28 = vld [vmem:[#allocation6 + $0x380] sm:$0xff] }
 0x2a2   :  { %1863 = vmatprep.subr.bf16.mxu0 %v1862_v29  ;;  %v284_v29 = vld [vmem:[#allocation6 + $0x390] sm:$0xff] }
 0x2a3   :  { %v1896_v32 = vpack.c.bf16 %v284_v29, %v282_v28  ;;  %v686_v28 = vld [vmem:[%s2653_s5 + $0x20] sm:$0xff]  ;;  %v687_v29 = vld [vmem:[%s2653_s5 + $0x28] sm:$0xff] }
 0x2a4   :  { %v1913_v30 = vpack.c.bf16 %v687_v29, %v686_v28 }
 0x2a5   :  { %1865 = vmatpush1.bf16.msra.mxu0 %v1864_v34  ;;  %v286_v34 = vld [vmem:[#allocation6 + $0x3a0] sm:$0xff] }
 0x2a6   :  { %1867 = vmatprep.subr.bf16.mxu0 %v1866_v36  ;;  %v288_v36 = vld [vmem:[#allocation6 + $0x3b0] sm:$0xff] }
 0x2a7   :  { %v1900_v42 = vpack.c.bf16 %v288_v36, %v286_v34  ;;  %v690_v34 = vld [vmem:[%s2653_s5 + $0x40] sm:$0xff]  ;;  %v691_v36 = vld [vmem:[%s2653_s5 + $0x48] sm:$0xff] }
 0x2a8   :  { %v1919_v37 = vpack.c.bf16 %v691_v36, %v690_v34 }
 0x2a9   :  { %1869 = vmatpush1.bf16.msra.mxu0 %v1868_v46  ;;  %v290_v46 = vld [vmem:[#allocation6 + $0x3c0] sm:$0xff] }
 0x2aa   :  { %1871 = vmatprep.subr.bf16.mxu0 %v1870_v48  ;;  %v292_v48 = vld [vmem:[#allocation6 + $0x3d0] sm:$0xff] }
 0x2ab   :  { %v1904_v49 = vpack.c.bf16 %v292_v48, %v290_v46  ;;  %v694_v46 = vld [vmem:[%s2653_s5 + $0x60] sm:$0xff]  ;;  %v695_v48 = vld [vmem:[%s2653_s5 + $0x68] sm:$0xff] }
 0x2ad   :  { %1873 = vmatpush1.bf16.msra.mxu0 %v1872_v53  ;;  %v528_v53 = vmax.f32 %v505_v51, %v521_v52  ;;  %v697_v52 = vld [vmem:[%s2653_s5 + $0x78] sm:$0xff] }
 0x2ae   :  { %1875 = vmatprep.subr.bf16.mxu0 %v1874_v43  ;;  %v2321_v43 = vld [vmem:[%s2651_s3 + $0x8] sm:$0xff] }
 0x2af   :  { %915 = vperm.xlu0 %2041, %v2321_v43  }
 0x2b1   :  { %1877 = vmatpush1.bf16.msra.mxu0 %v1876_v62  ;;  %v732_v62 = vpop.permute.xlu1 %731 }
 0x2b2   :  { %1879 = vmatprep.subr.bf16.mxu0 %v1878_v63  ;;  %v734_v63 = vpop.permute.xlu0 %733 }
 0x2b5   :  { %1881 = vmatpush1.bf16.msra.mxu0 %v1880_v8 }
 0x2b6   :  { %1883 = vmatprep.subr.bf16.mxu0 %v1882_v9 }
 0x2b9   :  { %1885 = vmatpush1.bf16.msra.mxu0 %v1884_v14  ;;  %v2367_v14 = vld [vmem:[%s2651_s3 + $0x10] sm:$0xff] }
 0x2ba   :  { %1887 = vmatprep.subr.bf16.mxu0 %v1886_v15 }
 0x2bd   :  { %1889 = vmatpush1.bf16.msra.mxu0 %v1888_v20 }
 0x2be   :  { %1891 = vmatprep.subr.bf16.mxu0 %v1890_v21  ;;  %v682_v21 = vld [vmem:[%s2653_s5] sm:$0xff] }
 0x2bf   :  { %v1907_v25 = vpack.c.bf16 %v683_v22, %v682_v21 }
 0x2c1   :  { %1893 = vmatpush1.bf16.msra.mxu0 %v1892_v26  ;;  %v685_v26 = vld [vmem:[%s2653_s5 + $0x18] sm:$0xff] }
 0x2c2   :  { %1895 = vmatprep.subr.bf16.mxu0 %v1894_v27  ;;  %v1910_v27 = vpack.c.bf16 %v685_v26, %v684_v23  ;;  %v712_v26 = vld [vmem:[%s2653_s5 + $0xf0] sm:$0x7f] }
 0x2c5   :  { %1897 = vmatpush1.bf16.msra.mxu0 %v1896_v32  ;;  %v689_v32 = vld [vmem:[%s2653_s5 + $0x38] sm:$0xff] }
 0x2c6   :  { %1899 = vmatprep.subr.bf16.mxu0 %v1898_v33  ;;  %v1916_v33 = vpack.c.bf16 %v689_v32, %v688_v31 }
 0x2c9   :  { %1901 = vmatpush1.bf16.msra.mxu0 %v1900_v42  ;;  %v693_v42 = vld [vmem:[%s2653_s5 + $0x58] sm:$0xff] }
 0x2ca   :  { %1903 = vmatprep.subr.bf16.mxu0 %v1902_v45  ;;  %v1922_v45 = vpack.c.bf16 %v693_v42, %v692_v41 }
 0x2cd   :  { %1905 = vmatpush1.bf16.msra.mxu0 %v1904_v49  ;;  %v1925_v49 = vpack.c.bf16 %v695_v48, %v694_v46 }
 0x2ce   :  { %1616 = vmatprep.subr.msk.mxu0 %vm303_vm0, %v295_v50  ;;  %v696_v50 = vld [vmem:[%s2653_s5 + $0x70] sm:$0xff] }
 0x2d1   :  { %1617 = vmatpush1.msk.msra.mxu0 %vm303_vm0, %v294_v40  ;;  %v1928_v40 = vpack.c.bf16 %v697_v52, %v696_v50  ;;  %vm1600_vm0 = vcmask 1024  }
 0x2d2   :  { %676 = vmatmul.mubr.f32.vlgmr.msra.gmra.mrb[0].mxu0 %v528_v53  ;;  %1999 = vmatprep.subr.bf16.mxu0 %v2131_v24  ;;  %v698_v53 = vld [vmem:[%s2653_s5 + $0x80] sm:$0xff] }
 0x2d3   :  { %1779 = vmatprep.mubr.msk.f32.mxu0 %vm2136_vm11, %v2127_v3 }
 0x316   :  { %v911_v22 = vpop.permute.xlu1 %910 }
 0x32e   :  { %v916_v23 = vpop.permute.xlu0 %915 }
 0x3a5   :  { %v677_v51 = vpop.f32.mrb[0].mxu0 }
 0x3a6   :  { %v679_v38 = vpop.f32.mrb[1].mxu0 }
 0x3a7   :  { %752 = vmatprep.subr.mxu1 %v679_v38  ;;  %v700_v38 = vld [vmem:[%s2653_s5 + $0x90] sm:$0xff] }
 0x3a8   :  { %753 = vmatpush1.msra.mxu1 %v677_v51  ;;  %v1931_v51 = vpack.c.bf16 %v699_v44, %v698_v53 }
 0x3a9   :  { %1619 = vmatmul.mubr.msk.f32.vlgmr.msra.gmra.mrb[8].mxu1 %vm735_vm4, %v720_v58  ;;  %1906 = vmatprep.subr.bf16.mxu1 %v2131_v24  ;;  %v701_v58 = vld [vmem:[%s2653_s5 + $0x98] sm:$0xff] }
 0x3aa   :  { %822 = vmatprep.mubr.f32.mxu1 %v2127_v3  ;;  %1908 = vmatpush1.bf16.msra.mxu1 %v1907_v25  ;;  %v926_v25 = vpop.permute.xlu1 %925 }
 0x3ab   :  { %1909 = vmatprep.subr.bf16.mxu1 %v2131_v24 }
 0x3ad   :  { %1620 = vmatmul.mubr.msk.f32.gmra.mrb[10].mxu1 %vm735_vm4, %v722_v7  ;;  %v1934_v7 = vpack.c.bf16 %v701_v58, %v700_v38 }
 0x3ae   :  { %828 = vmatprep.mubr.f32.mxu1 %v2127_v3  ;;  %1911 = vmatpush1.bf16.msra.mxu1 %v1910_v27 }
 0x3af   :  { %1912 = vmatprep.subr.bf16.mxu1 %v2131_v24 }
 0x3b1   :  { %1621 = vmatmul.mubr.msk.f32.gmra.mrb[12].mxu1 %vm735_vm4, %v724_v2  ;;  %v702_v2 = vld [vmem:[%s2653_s5 + $0xa0] sm:$0xff] }
 0x3b2   :  { %834 = vmatprep.mubr.f32.mxu1 %v2127_v3  ;;  %1914 = vmatpush1.bf16.msra.mxu1 %v1913_v30 }
 0x3b3   :  { %1915 = vmatprep.subr.bf16.mxu1 %v2131_v24 }
 0x3b5   :  { %1622 = vmatmul.mubr.msk.f32.gmra.mrb[14].mxu1 %vm735_vm4, %v726_v59  ;;  %v703_v59 = vld [vmem:[%s2653_s5 + $0xa8] sm:$0xff] }
 0x3b6   :  { %840 = vmatprep.mubr.f32.mxu1 %v2127_v3  ;;  %1917 = vmatpush1.bf16.msra.mxu1 %v1916_v33 }
 0x3b7   :  { %1918 = vmatprep.subr.bf16.mxu1 %v2131_v24 }
 0x3b9   :  { %1623 = vmatmul.mubr.msk.f32.gmra.mrb[16].mxu1 %vm735_vm4, %v728_v60  ;;  %v1937_v60 = vpack.c.bf16 %v703_v59, %v702_v2 }
 0x3ba   :  { %846 = vmatprep.mubr.f32.mxu1 %v2127_v3  ;;  %1920 = vmatpush1.bf16.msra.mxu1 %v1919_v37 }
 0x3bb   :  { %1921 = vmatprep.subr.bf16.mxu1 %v2131_v24 }
 0x3bd   :  { %1624 = vmatmul.mubr.msk.f32.gmra.mrb[18].mxu1 %vm735_vm4, %v730_v61  ;;  %v704_v61 = vld [vmem:[%s2653_s5 + $0xb0] sm:$0xff] }
 0x3be   :  { %852 = vmatprep.mubr.f32.mxu1 %v2127_v3  ;;  %1923 = vmatpush1.bf16.msra.mxu1 %v1922_v45 }
 0x3bf   :  { %1924 = vmatprep.subr.bf16.mxu1 %v2131_v24 }
 0x3c1   :  { %1625 = vmatmul.mubr.msk.f32.gmra.mrb[20].mxu1 %vm735_vm4, %v732_v62  ;;  %v705_v62 = vld [vmem:[%s2653_s5 + $0xb8] sm:$0xff] }
 0x3c2   :  { %858 = vmatprep.mubr.f32.mxu1 %v2127_v3  ;;  %1926 = vmatpush1.bf16.msra.mxu1 %v1925_v49 }
 0x3c3   :  { %1927 = vmatprep.subr.bf16.mxu1 %v2131_v24 }
 0x3c5   :  { %1626 = vmatmul.mubr.msk.f32.gmra.mrb[22].mxu1 %vm735_vm4, %v734_v63  ;;  %v1940_v63 = vpack.c.bf16 %v705_v62, %v704_v61 }
 0x3c6   :  { %1929 = vmatpush1.bf16.msra.mxu1 %v1928_v40 }
 0x3c7   :  { %1930 = vmatprep.subr.bf16.mxu1 %v2131_v24 }
 0x3ca   :  { %1932 = vmatpush1.bf16.msra.mxu1 %v1931_v51 }
 0x3cb   :  { %1933 = vmatprep.subr.bf16.mxu1 %v2131_v24 }
 0x3ce   :  { %1935 = vmatpush1.bf16.msra.mxu1 %v1934_v7 }
 0x3cf   :  { %1936 = vmatprep.subr.bf16.mxu1 %v2131_v24 }
 0x3d2   :  { %1938 = vmatpush1.bf16.msra.mxu1 %v1937_v60 }
 0x3d3   :  { %1939 = vmatprep.subr.bf16.mxu1 %v2131_v24 }
 0x3d6   :  { %1941 = vmatpush1.bf16.msra.mxu1 %v1940_v63 }
 0x3d7   :  { %1942 = vmatprep.subr.bf16.mxu1 %v2131_v24 }
 0x47c   :  { %v2346_v0 = vpop.f32.mrb[8].mxu1 }
 0x47d   :  { %v2348_v1 = vpop.f32.mrb[9].mxu1 }
 0x480   :  { %v2350_v4 = vpop.f32.mrb[10].mxu1 }
 0x481   :  { %v2352_v6 = vpop.f32.mrb[11].mxu1 }
 0x484   :  { %v2354_v8 = vpop.f32.mrb[12].mxu1 }
 0x485   :  { %v2356_v9 = vpop.f32.mrb[13].mxu1 }
 0x488   :  { %v2358_v10 = vpop.f32.mrb[14].mxu1 }
 0x489   :  { %v2360_v11 = vpop.f32.mrb[15].mxu1 }
 0x48c   :  { %v842_v12 = vpop.f32.mrb[16].mxu1 }
 0x48d   :  { %873 = vrot.lane.b32.xlu0 %v842_v12, %s2128_s0  ;;  %v844_v13 = vpop.f32.mrb[17].mxu1  ;;  %v706_v12 = vld [vmem:[%s2653_s5 + $0xc0] sm:$0xff] }
 0x48e   :  { %875 = vrot.lane.b32.xlu1 %v844_v13, %s2128_s0  ;;  %v707_v13 = vld [vmem:[%s2653_s5 + $0xc8] sm:$0xff] }
 0x490   :  { %v848_v15 = vpop.f32.mrb[18].mxu1 }
 0x491   :  { %920 = vperm.xlu0 %2041, %v2367_v14   ;;  %v850_v16 = vpop.f32.mrb[19].mxu1 }
 0x492   :  { %877 = vrot.lane.b32.xlu1 %v848_v15, %s2128_s0  ;;  %v1943_v15 = vpack.c.bf16 %v707_v13, %v706_v12 }
 0x494   :  { %v854_v17 = vpop.f32.mrb[20].mxu1  ;;  %1944 = vmatpush1.bf16.msra.mxu1 %v1943_v15 }
 0x495   :  { %v856_v18 = vpop.f32.mrb[21].mxu1  ;;  %1945 = vmatprep.subr.bf16.mxu1 %v2131_v24 }
 0x496   :  { %879 = vrot.lane.b32.xlu1 %v850_v16, %s2128_s0  ;;  %883 = vrot.lane.b32.xlu0 %v856_v18, %s2128_s0  ;;  %v708_v16 = vld [vmem:[%s2653_s5 + $0xd0] sm:$0xff] }
 0x498   :  { %v860_v19 = vpop.f32.mrb[22].mxu1 }
 0x499   :  { %v862_v20 = vpop.f32.mrb[23].mxu1 }
 0x49a   :  { %881 = vrot.lane.b32.xlu1 %v854_v17, %s2128_s0  ;;  %885 = vrot.lane.b32.xlu0 %v860_v19, %s2128_s0  ;;  %v709_v17 = vld [vmem:[%s2653_s5 + $0xd8] sm:$0xff]  ;;  %v710_v19 = vld [vmem:[%s2653_s5 + $0xe0] sm:$0xff] }
 0x49b   :  { %v1946_v18 = vpack.c.bf16 %v709_v17, %v708_v16 }
 0x49d   :  { %1947 = vmatpush1.bf16.msra.mxu1 %v1946_v18 }
 0x49e   :  { %887 = vrot.lane.b32.xlu1 %v862_v20, %s2128_s0  ;;  %v711_v20 = vld [vmem:[%s2653_s5 + $0xe8] sm:$0xff]  ;;  %1948 = vmatprep.subr.bf16.mxu1 %v2131_v24  ;;  %s2132_s5 = smov 64  }
 0x49f   :  { %v1949_v21 = vpack.c.bf16 %v711_v20, %v710_v19 }
 0x4a1   :  { %1950 = vmatpush1.bf16.msra.mxu1 %v1949_v21 }
 0x4a2   :  { %1065 = vmatprep.subr.mxu1 %v2127_v3 }
 0x4a5   :  { %1627 = vmatpush1.msk.msra.mxu1 %vm1001_vm5, %v712_v26 }
 0x4ff   :  { %v874_v27 = vpop.permute.xlu0 %873 }
 0x500   :  { %v876_v28 = vpop.permute.xlu1 %875 }
 0x501   :  { %v889_v29 = vsel %vm482_vm2, %v874_v27, %v876_v28  ;;  %v902_v30 = vadd.f32 %v876_v28, %v2348_v1 }
 0x502   :  { %v901_v31 = vadd.f32 %v889_v29, %v2346_v0  ;;  %v2133_v29 = vmov 2  }
 0x503   :  { %v929_v32 = vadd.f32 %v911_v22, %v902_v30  ;;  %2043 = vset.pattern.permute.xlu1 %v2133_v29  ;;  %2042 = vset.pattern.permute.xlu0 %v2133_v29  ;;  %v2528_v30 = vld [vmem:[%s2651_s3] sm:$0xff] }
 0x504   :  { %v878_v33 = vpop.permute.xlu1 %877  ;;  %v928_v34 = vadd.f32 %v911_v22, %v901_v31 }
 0x505   :  { %v937_v36 = vmax.f32 %v929_v32, 0.0 }
 0x506   :  { %v936_v37 = vmax.f32 %v928_v34, 0.0 }
 0x507   :  { %954 = vrot.lane.b32.xlu1 %v937_v36, %s2128_s0 }
 0x508   :  { %v880_v41 = vpop.permute.xlu1 %879  ;;  %952 = vrot.lane.b32.xlu0 %v936_v37, %s2128_s0 }
 0x509   :  { %v890_v42 = vsel %vm482_vm2, %v878_v33, %v880_v41  ;;  %v904_v45 = vadd.f32 %v880_v41, %v2352_v6 }
 0x50a   :  { %v903_v46 = vadd.f32 %v890_v42, %v2350_v4 }
 0x50b   :  { %v931_v48 = vadd.f32 %v916_v23, %v904_v45 }
 0x50c   :  { %v882_v1 = vpop.permute.xlu1 %881  ;;  %v930_v49 = vadd.f32 %v916_v23, %v903_v46 }
 0x50d   :  { %v939_v0 = vmax.f32 %v931_v48, 0.0 }
 0x50e   :  { %v938_v50 = vmax.f32 %v930_v49, 0.0 }
 0x50f   :  { %958 = vrot.lane.b32.xlu1 %v939_v0, %s2128_s0 }
 0x510   :  { %v921_v52 = vpop.permute.xlu0 %920  ;;  %956 = vrot.lane.b32.xlu0 %v938_v50, %s2128_s0  ;;  %v888_v40 = vpop.permute.xlu1 %887 }
 0x511   :  { %v908_v44 = vadd.f32 %v888_v40, %v2360_v11 }
 0x513   :  { %v935_v2 = vadd.f32 %v926_v25, %v908_v44 }
 0x514   :  { %v884_v53 = vpop.permute.xlu0 %883 }
 0x515   :  { %v891_v51 = vsel %vm482_vm2, %v882_v1, %v884_v53  ;;  %v906_v6 = vadd.f32 %v884_v53, %v2356_v9  ;;  %v943_v63 = vmax.f32 %v935_v2, 0.0  ;;  %v2506_v9 = vld [vmem:[#allocation4] sm:$0xff]  ;;  %v1093_v2 = vld [vmem:[%s2654_s6 + $0x18] sm:$0xff] }
 0x516   :  { %v905_v4 = vadd.f32 %v891_v51, %v2354_v8  ;;  %v2045_v8 = vld [vmem:[#allocation4 + $0x8] sm:$0xff] }
 0x517   :  { %v933_v38 = vadd.f32 %v921_v52, %v906_v6  ;;  %v1090_v6 = vld [vmem:[%s2654_s6] sm:$0xff] }
 0x518   :  { %v886_v58 = vpop.permute.xlu0 %885  ;;  %v932_v7 = vadd.f32 %v921_v52, %v905_v4  ;;  %v1091_v4 = vld [vmem:[%s2654_s6 + $0x8] sm:$0xff] }
 0x519   :  { %v892_v59 = vsel %vm482_vm2, %v886_v58, %v888_v40  ;;  %v941_v60 = vmax.f32 %v933_v38, 0.0  ;;  %v1092_v38 = vld [vmem:[%s2654_s6 + $0x10] sm:$0xff] }
 0x51a   :  { %v907_v61 = vadd.f32 %v892_v59, %v2358_v10  ;;  %v940_v62 = vmax.f32 %v932_v7, 0.0  ;;  %v1959_v7 = vpack.c.bf16 %v1091_v4, %v1090_v6 }
 0x51b   :  { %962 = vrot.lane.b32.xlu1 %v941_v60, %s2128_s0 }
 0x51c   :  { %960 = vrot.lane.b32.xlu0 %v940_v62, %s2128_s0  ;;  %v934_v11 = vadd.f32 %v926_v25, %v907_v61  ;;  %v1094_v61 = vld [vmem:[%s2654_s6 + $0x20] sm:$0xff] }
 0x51e   :  { %v942_v12 = vmax.f32 %v934_v11, 0.0 }
 0x51f   :  { %966 = vrot.lane.b32.xlu1 %v943_v63, %s2128_s0 }
 0x520   :  { %964 = vrot.lane.b32.xlu0 %v942_v12, %s2128_s0 }
 0x523   :  { %1108 = vrot.lane.b32.xlu1 %v2045_v8, %s2132_s5 }
 0x524   :  { %1106 = vrot.lane.b32.xlu0 %v2506_v9, %s2132_s5 }
 0x527   :  { %1112 = vrot.lane.b32.xlu1 %v2283_v54, %s2132_s5 }
 0x528   :  { %1110 = vrot.lane.b32.xlu0 %v2281_v39, %s2132_s5 }
 0x52b   :  { %1116 = vrot.lane.b32.xlu1 %v2289_v56, %s2132_s5 }
 0x52c   :  { %1114 = vrot.lane.b32.xlu0 %v2287_v55, %s2132_s5 }
 0x52f   :  { %1120 = vrot.lane.b32.xlu1 %v2295_v35, %s2132_s5 }
 0x530   :  { %1118 = vrot.lane.b32.xlu0 %v2293_v57, %s2132_s5 }
 0x533   :  { %1269 = vperm.xlu1 %2043, %v2321_v43  }
 0x534   :  { %1265 = vperm.xlu0 %2042, %v2528_v30  }
 0x537   :  { %1273 = vperm.xlu1 %2043, %v2367_v14  }
 0x53b   :  { %1277 = vperm.xlu1 %2043, %v2328_v47  }
 0x579   :  { %v955_v10 = vpop.permute.xlu1 %954 }
 0x57a   :  { %v981_v13 = vmax.f32 %v937_v36, %v955_v10  ;;  %v953_v15 = vpop.permute.xlu0 %952 }
 0x57b   :  { %v968_v16 = vsel %vm482_vm2, %v953_v15, %v955_v10  ;;  %v1098_v10 = vld [vmem:[%s2654_s6 + $0x40] sm:$0xff] }
 0x57c   :  { %v980_v17 = vmax.f32 %v936_v37, %v968_v16  ;;  %1628 = vmatprep.mubr.msk.f32.mxu1 %vm988_vm6, %v981_v13  ;;  %v1099_v13 = vld [vmem:[%s2654_s6 + $0x48] sm:$0xff]  ;;  %v1100_v16 = vld [vmem:[%s2654_s6 + $0x50] sm:$0xff] }
 0x57d   :  { %v1975_v15 = vpack.c.bf16 %v1099_v13, %v1098_v10 }
 0x57e   :  { %1070 = vmatmul.mubr.f32.vlgmr.msra.gmra.mrb[24].mxu1 %v980_v17  ;;  %v1101_v17 = vld [vmem:[%s2654_s6 + $0x58] sm:$0xff] }
 0x581   :  { %v959_v54 = vpop.permute.xlu1 %958 }
 0x582   :  { %v983_v39 = vmax.f32 %v939_v0, %v959_v54  ;;  %v957_v18 = vpop.permute.xlu0 %956 }
 0x583   :  { %v969_v56 = vsel %vm482_vm2, %v957_v18, %v959_v54  ;;  %v1979_v54 = vpack.c.bf16 %v1101_v17, %v1100_v16  ;;  %v1103_v18 = vld [vmem:[%s2654_s6 + $0x68] sm:$0xff] }
 0x584   :  { %v982_v55 = vmax.f32 %v938_v50, %v969_v56  ;;  %1629 = vmatprep.mubr.msk.f32.mxu1 %vm988_vm6, %v983_v39  ;;  %v1102_v39 = vld [vmem:[%s2654_s6 + $0x60] sm:$0xff] }
 0x585   :  { %v1983_v56 = vpack.c.bf16 %v1103_v18, %v1102_v39 }
 0x586   :  { %1075 = vmatmul.mubr.f32.gmra.mrb[26].mxu1 %v982_v55 }
 0x58d   :  { %v963_v57 = vpop.permute.xlu1 %962 }
 0x58e   :  { %v985_v35 = vmax.f32 %v941_v60, %v963_v57  ;;  %v961_v19 = vpop.permute.xlu0 %960  ;;  %v1963_v60 = vpack.c.bf16 %v1093_v2, %v1092_v38  ;;  %v1411_v38 = vld [vmem:[%s2655_s7 + $0x10] sm:$0xff] }
 0x58f   :  { %v970_v20 = vsel %vm482_vm2, %v961_v19, %v963_v57  ;;  %v1104_v57 = vld [vmem:[%s2654_s6 + $0x70] sm:$0xff] }
 0x590   :  { %v984_v21 = vmax.f32 %v940_v62, %v970_v20  ;;  %1630 = vmatprep.mubr.msk.f32.mxu1 %vm988_vm6, %v985_v35  ;;  %v1095_v62 = vld [vmem:[%s2654_s6 + $0x28] sm:$0xff]  ;;  %v1105_v35 = vld [vmem:[%s2654_s6 + $0x78] sm:$0x3] }
 0x591   :  { %v967_v22 = vpop.permute.xlu1 %966  ;;  %v1967_v11 = vpack.c.bf16 %v1095_v62, %v1094_v61  ;;  %v1414_v61 = vld [vmem:[%s2655_s7 + $0x28] sm:$0xff] }
 0x592   :  { %v987_v23 = vmax.f32 %v943_v63, %v967_v22  ;;  %v965_v25 = vpop.permute.xlu0 %964  ;;  %1080 = vmatmul.mubr.f32.gmra.mrb[28].mxu1 %v984_v21  ;;  %v1096_v63 = vld [vmem:[%s2654_s6 + $0x30] sm:$0xff]  ;;  %v1987_v21 = vpack.c.bf16 %v1105_v35, %v1104_v57 }
 0x593   :  { %v971_v26 = vsel %vm482_vm2, %v965_v25, %v967_v22 }
 0x594   :  { %v986_v27 = vmax.f32 %v942_v12, %v971_v26  ;;  %1631 = vmatprep.mubr.msk.f32.mxu1 %vm988_vm6, %v987_v23  ;;  %v1097_v12 = vld [vmem:[%s2654_s6 + $0x38] sm:$0xff]  ;;  %s2135_s6 = smov 32  }
 0x595   :  { %v1109_v41 = vpop.permute.xlu1 %1108  ;;  %v1971_v8 = vpack.c.bf16 %v1097_v12, %v1096_v63  ;;  %v1415_v12 = vld [vmem:[%s2655_s7 + $0x30] sm:$0xff] }
 0x596   :  { %1085 = vmatmul.mubr.f32.gmra.mrb[30].mxu1 %v986_v27  ;;  %v1107_v28 = vpop.permute.xlu0 %1106 }
 0x597   :  { %1702 = vmatprep.mubr.msk.f32.mxu1 %vm1122_vm7, %v1107_v28 }
 0x599   :  { %v1113_v1 = vpop.permute.xlu1 %1112 }
 0x59a   :  { %v1111_v48 = vpop.permute.xlu0 %1110 }
 0x59d   :  { %v1117_v14 = vpop.permute.xlu1 %1116 }
 0x59e   :  { %v1115_v47 = vpop.permute.xlu0 %1114 }
 0x5a1   :  { %v1121_v0 = vpop.permute.xlu1 %1120 }
 0x5a2   :  { %v1119_v49 = vpop.permute.xlu0 %1118 }
 0x5b2   :  { %v1270_v55 = vpop.permute.xlu1 %1269 }
 0x5b3   :  { %v1266_v19 = vpop.permute.xlu0 %1265 }
 0x5b6   :  { %v1274_v20 = vpop.permute.xlu1 %1273 }
 0x5ba   :  { %v1278_v23 = vpop.permute.xlu1 %1277 }
 0x651   :  { %v1071_v31 = vpop.f32.mrb[24].mxu1 }
 0x652   :  { %v1073_v32 = vpop.f32.mrb[25].mxu1 }
 0x659   :  { %v1076_v33 = vpop.f32.mrb[26].mxu1 }
 0x65a   :  { %v1951_v34 = vpack.c.bf16 %v1076_v33, %v1071_v31  ;;  %v1078_v36 = vpop.f32.mrb[27].mxu1 }
 0x65c   :  { %1952 = vmatprep.subr.bf16.mxu1 %v1951_v34 }
 0x65d   :  { %1954 = vmatpush3.bf16.msra.mxu1 %v1951_v34 }
 0x665   :  { %v1081_v37 = vpop.f32.mrb[28].mxu1 }
 0x666   :  { %v1083_v43 = vpop.f32.mrb[29].mxu1 }
 0x669   :  { %v1086_v42 = vpop.f32.mrb[30].mxu1 }
 0x66a   :  { %v1955_v45 = vpack.c.bf16 %v1086_v42, %v1081_v37  ;;  %v1088_v46 = vpop.f32.mrb[31].mxu1 }
 0x66c   :  { %1956 = vmatprep.subr.bf16.mxu1 %v1955_v45 }
 0x66d   :  { %1958 = vmatpush3.bf16.msra.mxu1 %v1955_v45 }
 0x66e   :  { %1960 = vmatprep.subr.bf16.mxu1 %v1959_v7 }
 0x670   :  { %1703 = vmatmul.mubr.msk.f32.vlgmr.msra.gmra.mrb[32].mxu1 %vm1122_vm7, %v1109_v41 }
 0x671   :  { %1705 = vmatprep.mubr.msk.f32.mxu1 %vm1122_vm7, %v1111_v48  ;;  %1962 = vmatpush3.bf16.msra.mxu1 %v1959_v7  ;;  %v1412_v7 = vld [vmem:[%s2655_s7 + $0x18] sm:$0xff] }
 0x672   :  { %1964 = vmatprep.subr.bf16.mxu1 %v1963_v60  ;;  %v2003_v2 = vpack.c.bf16 %v1412_v7, %v1411_v38 }
 0x674   :  { %1706 = vmatmul.mubr.msk.f32.gmra.mrb[34].mxu1 %vm1122_vm7, %v1113_v1 }
 0x675   :  { %1708 = vmatprep.mubr.msk.f32.mxu1 %vm1122_vm7, %v1115_v47  ;;  %1966 = vmatpush3.bf16.msra.mxu1 %v1963_v60  ;;  %v1413_v60 = vld [vmem:[%s2655_s7 + $0x20] sm:$0xff] }
 0x676   :  { %1968 = vmatprep.subr.bf16.mxu1 %v1967_v11  ;;  %v2006_v63 = vpack.c.bf16 %v1414_v61, %v1413_v60 }
 0x678   :  { %1709 = vmatmul.mubr.msk.f32.gmra.mrb[36].mxu1 %vm1122_vm7, %v1117_v14 }
 0x679   :  { %1711 = vmatprep.mubr.msk.f32.mxu1 %vm1122_vm7, %v1119_v49  ;;  %1970 = vmatpush3.bf16.msra.mxu1 %v1967_v11 }
 0x67a   :  { %1972 = vmatprep.subr.bf16.mxu1 %v1971_v8 }
 0x67c   :  { %1712 = vmatmul.mubr.msk.f32.gmra.mrb[38].mxu1 %vm1122_vm7, %v1121_v0 }
 0x67d   :  { %1974 = vmatpush3.bf16.msra.mxu1 %v1971_v8  ;;  %v1416_v8 = vld [vmem:[%s2655_s7 + $0x38] sm:$0x7] }
 0x67e   :  { %1976 = vmatprep.subr.bf16.mxu1 %v1975_v15  ;;  %v2009_v10 = vpack.c.bf16 %v1416_v8, %v1415_v12 }
 0x681   :  { %1978 = vmatpush3.bf16.msra.mxu1 %v1975_v15 }
 0x682   :  { %1980 = vmatprep.subr.bf16.mxu1 %v1979_v54 }
 0x685   :  { %1982 = vmatpush3.bf16.msra.mxu1 %v1979_v54 }
 0x686   :  { %1984 = vmatprep.subr.bf16.mxu1 %v1983_v56 }
 0x689   :  { %1986 = vmatpush3.bf16.msra.mxu1 %v1983_v56  ;;  %v1588_v56 = vsub.s32 2, %v2230_v5 }
 0x68a   :  { %1989 = vmatprep.subr.msk.bf16.mxu1 %vm1988_vm9, %v1987_v21 }
 0x68d   :  { %1992 = vmatpush3.bf16.msk.msra.mxu1 %vm1988_vm9, %v1987_v21 }
 0x68e   :  { %1993 = vmatprep.subr.bf16.mxu1 %v2131_v24 }
 0x743   :  { %v2540_v50 = vpop.f32.mrb[32].mxu1 }
 0x744   :  { %v1205_v52 = vpop.f32.mrb[33].mxu1 }
 0x747   :  { %v2542_v40 = vpop.f32.mrb[34].mxu1 }
 0x748   :  { %v2544_v53 = vpop.f32.mrb[35].mxu1 }
 0x74b   :  { %v1710_v44 = vpop.f32.mrb[36].mxu1 }
 0x74c   :  { %v1225_v51 = vpop.f32.mrb[37].mxu1 }
 0x74d   :  { %1248 = vrot.lane.b32.xlu0 %v1225_v51, %s2128_s0 }
 0x74f   :  { %v1713_v58 = vpop.f32.mrb[38].mxu1 }
 0x750   :  { %v1235_v59 = vpop.f32.mrb[39].mxu1 }
 0x751   :  { %1250 = vrot.lane.b32.xlu0 %v1710_v44, %s2128_s0  ;;  %1252 = vrot.lane.b32.xlu1 %v1235_v59, %s2128_s0 }
 0x755   :  { %1254 = vrot.lane.b32.xlu0 %v1713_v58, %s2128_s0 }
 0x7bf   :  { %v1249_v22 = vpop.permute.xlu0 %1248 }
 0x7c0   :  { %v1260_v25 = vadd.f32 %v1249_v22, %v1205_v52  ;;  %v2137_v52 = vmov 3  }
 0x7c1   :  { %2044 = vset.pattern.permute.xlu0 %v2137_v52 }
 0x7c2   :  { %v1280_v26 = vadd.f32 %v1266_v19, %v1260_v25 }
 0x7c3   :  { %v1251_v27 = vpop.permute.xlu0 %1250  ;;  %v1253_v28 = vpop.permute.xlu1 %1252 }
 0x7c4   :  { %v1284_v29 = vmax.f32 %v1280_v26, 0.0  ;;  %v1261_v31 = vadd.f32 %v2540_v50, %v1251_v27  ;;  %v1262_v32 = vadd.f32 %v1253_v28, %v2544_v53 }
 0x7c6   :  { %v1281_v33 = vadd.f32 %v1270_v55, %v1261_v31  ;;  %v1282_v34 = vadd.f32 %v1274_v20, %v1262_v32  ;;  %1292 = vrot.lane.b32.xlu1 %v1284_v29, %s2128_s0  ;;  %v2048_v55 = vld [vmem:[#allocation2] sm:$0x77] }
 0x7c7   :  { %v1255_v36 = vpop.permute.xlu0 %1254  ;;  %v1589_v57 = vrot.slane %v2048_v55, %v1588_v56 }
 0x7c8   :  { %v1285_v37 = vmax.f32 %v1281_v33, 0.0  ;;  %v1286_v43 = vmax.f32 %v1282_v34, 0.0  ;;  %v1263_v41 = vadd.f32 %v2542_v40, %v1255_v36 }
 0x7ca   :  { %v1283_v42 = vadd.f32 %v1278_v23, %v1263_v41  ;;  %1294 = vrot.lane.b32.xlu0 %v1285_v37, %s2128_s0  ;;  %1296 = vrot.lane.b32.xlu1 %v1286_v43, %s2128_s0 }
 0x7cc   :  { %v1287_v45 = vmax.f32 %v1283_v42, 0.0 }
 0x7ce   :  { %1298 = vrot.lane.b32.xlu0 %v1287_v45, %s2128_s0  ;;  %1417 = vrot.lane.b32.xlu1 %v2506_v9, %s2135_s6 }
 0x7d2   :  { %1498 = vperm.xlu0 %2044, %v2528_v30   ;;  %v1410_v30 = vld [vmem:[%s2655_s7 + $0x8] sm:$0xff] }
 0x838   :  { %v1293_v46 = vpop.permute.xlu1 %1292 }
 0x839   :  { %v1304_v48 = vmax.f32 %v1284_v29, %v1293_v46 }
 0x83b   :  { %1746 = vmatprep.mubr.msk.f32.mxu1 %vm1308_vm10, %v1304_v48 }
 0x83c   :  { %v1295_v1 = vpop.permute.xlu0 %1294  ;;  %v1297_v47 = vpop.permute.xlu1 %1296 }
 0x83d   :  { %v1305_v14 = vmax.f32 %v1285_v37, %v1295_v1  ;;  %v1306_v49 = vmax.f32 %v1286_v43, %v1297_v47 }
 0x83f   :  { %1747 = vmatmul.mubr.msk.f32.vlgmr.msra.gmra.mrb[40].mxu1 %vm1308_vm10, %v1305_v14 }
 0x840   :  { %v1299_v0 = vpop.permute.xlu0 %1298  ;;  %1749 = vmatprep.mubr.msk.f32.mxu1 %vm1308_vm10, %v1306_v49  ;;  %v1418_v4 = vpop.permute.xlu1 %1417 }
 0x841   :  { %v1307_v50 = vmax.f32 %v1287_v45, %v1299_v0 }
 0x843   :  { %1750 = vmatmul.mubr.msk.f32.gmra.mrb[42].mxu1 %vm1308_vm10, %v1307_v50 }
 0x844   :  { %1760 = vmatprep.mubr.msk.f32.mxu1 %vm2136_vm11, %v2127_v3  ;;  %v1409_v3 = vld [vmem:[%s2655_s7] sm:$0xff]  ;;  %s2138_s7 = smov 98  }
 0x845   :  { %v2000_v58 = vpack.c.bf16 %v1410_v30, %v1409_v3 }
 0x847   :  { %2001 = vmatpush3.bf16.msra.mxu0 %v2000_v58 }
 0x848   :  { %2002 = vmatprep.subr.bf16.mxu0 %v2131_v24 }
 0x84b   :  { %2004 = vmatpush3.bf16.msra.mxu0 %v2003_v2 }
 0x84c   :  { %2005 = vmatprep.subr.bf16.mxu0 %v2131_v24 }
 0x84f   :  { %2007 = vmatpush3.bf16.msra.mxu0 %v2006_v63 }
 0x850   :  { %2008 = vmatprep.subr.bf16.mxu0 %v2131_v24 }
 0x851   :  { %v1499_v15 = vpop.permute.xlu0 %1498 }
 0x853   :  { %2011 = vmatpush3.bf16.msk.msra.mxu0 %vm2010_vm13, %v2009_v10 }
 0x912   :  { %v1748_v9 = vpop.f32.mrb[40].mxu1 }
 0x913   :  { %v1390_v40 = vpop.f32.mrb[41].mxu1 }
 0x914   :  { %v1994_v53 = vpack.c.bf16 %v1748_v9, %v1390_v40 }
 0x916   :  { %v1751_v44 = vpop.f32.mrb[42].mxu1  ;;  %1995 = vmatpush3.bf16.msra.mxu1 %v1994_v53 }
 0x917   :  { %v1400_v51 = vpop.f32.mrb[43].mxu1  ;;  %1996 = vmatprep.subr.bf16.mxu1 %v2131_v24 }
 0x918   :  { %v1997_v6 = vpack.c.bf16 %v1751_v44, %v1400_v51 }
 0x91a   :  { %1998 = vmatpush3.bf16.msra.mxu1 %v1997_v6 }
 0x91d   :  { %1761 = vmatmul.mubr.msk.f32.vlgmr.msra.gmra.mrb[44].mxu1 %vm1122_vm7, %v1418_v4 }
 0x9f0   :  { %v1487_v59 = vpop.f32.mrb[44].mxu1 }
 0x9f1   :  { %v1492_v62 = vrot.slane %v1487_v59, 2  ;;  %v1762_v11 = vpop.f32.mrb[45].mxu1 }
 0x9f3   :  { %1493 = vrot.lane.b32.xlu1 %v1492_v62, %s2128_s0 }
 0xa65   :  { %v1494_v13 = vpop.permute.xlu1 %1493 }
 0xa66   :  { %v1496_v16 = vadd.f32 %v1494_v13, %v1487_v59 }
 0xa68   :  { %v1501_v17 = vadd.f32 %v1499_v15, %v1496_v16 }
 0xa6a   :  { %v1502_v54 = vmax.f32 %v1501_v17, 0.0 }
 0xa6c   :  { %1504 = vrot.lane.b32.xlu1 %v1502_v54, %s2128_s0 }
 0xade   :  { %v1505_v39 = vpop.permute.xlu1 %1504 }
 0xadf   :  { %v1507_v18 = vmax.f32 %v1502_v54, %v1505_v39 }
 0xae1   :  { %1780 = vmatmul.mubr.msk.f32.vlgmr.msra.gmra.mrb[2].mxu0 %vm1508_vm14, %v1507_v18 }
 0xbb4   :  { %v1582_v35 = vpop.f32.mrb[2].mxu0 }
 0xbb5   :  { %v1590_v19 = vmul.f32 %v1589_v57, %v1582_v35  ;;  %v1781_v24 = vpop.f32.mrb[3].mxu0 }
 0xbb7   :  { %v1592_v20 = vsel %vm1591_vm15, %v1590_v19, 0.0 }
 0xbb8   :  { %1593 = vadd.xlane.f32.xlu0 %v1592_v20 }
 0xc45   :  { %v1594_v21 = vpop.xlane.xlu0 %1593 }
 0xc46   :  { %v1595_v22 = vadd.f32 %v1594_v21, %v1589_v57 }
 0xc48   :  { %1597 = vrot.lane.b32.xlu1 %v1595_v22, %s2138_s7 }
 0xcba   :  { %v1598_v23 = vpop.permute.xlu1 %1597 }
 0xcbb   :  { %1601 = vst.msk [vmem:[%s2656_s8] sm:$0x3] %vm1600_vm0, %v1598_v23 }
 0xcbc   :  { %1606 = vsyncpa [#allocation3], 1 }
 0xcbd   :  { %1607 = vsyncpa [#allocation5], 1 }

</bundles_post_ra>
